<compile_context>
chip_gen: v6e
topology: v6e:2x2x1
jax: 0.10.0
libtpu: 0.0.40
codegen_flags: <defaults>
</compile_context>

<pallas_src>
import jax
import jax.numpy as jnp
from jax.experimental import pallas as pl
from jax.experimental.pallas import tpu as pltpu


# ---------------------------------------------------------------------------
# Fused forward kernel (backbone MLP -> voting -> proposal head)
# ---------------------------------------------------------------------------

def _fused_forward_call(inputs_rs, params, *, cin, num_proposal, out_dim):
    """inputs_rs: (B, S, seed_stride*cin) where row i, lanes [0:cin] is the
    original point i*seed_stride (strided seed subsample expressed as a free
    reshape + lane slice)."""
    B, S, F = inputs_rs.shape
    P = num_proposal
    pstride = S // P
    C = params["vg_w1"].shape[0]          # 128 seed feature channels

    def kernel(x_ref,
               bb_w1, bb_b1, bb_w2, bb_b2,
               vg_w1, vg_t1, vg_w2, vg_t2, vg_w3, vg_b3,
               pn_w1, pn_b1, pn_w2, pn_b2, pn_w3, pn_b3,
               seed_xyz_o, seed_ft_o, vote_xyz_o, vote_ft_o,
               agg_xyz_o, scores_o, center_o):
        xs = x_ref[0]                                   # (S, seed_stride*cin)
        seed_pts = xs[:, :cin]                          # (S, cin)  strided seeds
        seed_xyz = xs[:, :3]                            # (S, 3)
        seed_xyz_o[0] = seed_xyz

        # --- backbone layer 1: K=cin is tiny -> VPU FMAs, not an MXU matmul
        h1 = seed_pts[:, 0:1] * bb_w1[0:1, :]
        for c in range(1, cin):
            h1 = h1 + seed_pts[:, c:c + 1] * bb_w1[c:c + 1, :]
        h1 = jnp.maximum(h1 + bb_b1[...], 0.0)          # (S, H=128)

        # --- backbone layer 2 (MXU, bf16 in / f32 acc)
        f = jnp.dot(h1.astype(jnp.bfloat16), bb_w2[...],
                    preferred_element_type=jnp.float32) + bb_b2[...]
        f = jnp.maximum(f, 0.0)                         # (S, C) seed features
        seed_ft_o[0] = f.T                              # (C, S) PyTorch layout

        # --- voting module (BN scales pre-folded into vg_w1 / vg_w2)
        h = jnp.maximum(jnp.dot(f.astype(jnp.bfloat16), vg_w1[...],
                                preferred_element_type=jnp.float32) + vg_t1[...], 0.0)
        h = jnp.maximum(jnp.dot(h.astype(jnp.bfloat16), vg_w2[...],
                                preferred_element_type=jnp.float32) + vg_t2[...], 0.0)
        # merged conv3: [feature residual | xyz offset | zero pad] -> (S, C+128)
        o3 = jnp.dot(h.astype(jnp.bfloat16), vg_w3[...],
                     preferred_element_type=jnp.float32) + vg_b3[...]
        res = o3[:, :C]
        off = o3[:, C:C + 3]
        vxyz = seed_xyz + off
        vote_xyz_o[0] = vxyz
        vf = f + res
        inv = jax.lax.rsqrt(jnp.sum(vf * vf, axis=-1, keepdims=True) + 1e-12)
        vf = vf * inv                                   # L2-normalized features
        vote_ft_o[0] = vf.T                             # (C, S)

        # --- proposal: strided vote subsample via a 0/1 selection matmul (MXU)
        p_ids = jax.lax.broadcasted_iota(jnp.int32, (P, S), 0)
        s_ids = jax.lax.broadcasted_iota(jnp.int32, (P, S), 1)
        sel = (s_ids == p_ids * pstride).astype(jnp.float32)      # (P, S)
        agg_xyz = jnp.dot(sel, vxyz, preferred_element_type=jnp.float32)  # (P, 3)
        agg_f = jnp.dot(sel, vf, preferred_element_type=jnp.float32)      # (P, C)

        h = jnp.maximum(jnp.dot(agg_f.astype(jnp.bfloat16), pn_w1[...],
                                preferred_element_type=jnp.float32) + pn_b1[...], 0.0)
        h = jnp.maximum(jnp.dot(h.astype(jnp.bfloat16), pn_w2[...],
                                preferred_element_type=jnp.float32) + pn_b2[...], 0.0)
        sc = jnp.dot(h.astype(jnp.bfloat16), pn_w3[...],
                     preferred_element_type=jnp.float32) + pn_b3[...]      # (P, 128)

        agg_xyz_o[0] = agg_xyz
        scores_o[0] = sc.T[:out_dim, :]                 # (out_dim, P) PyTorch layout
        center_o[0] = agg_xyz + sc[:, :3]

    w = params
    weight_args = (w["bb_w1"], w["bb_b1"], w["bb_w2"], w["bb_b2"],
                   w["vg_w1"], w["vg_t1"], w["vg_w2"], w["vg_t2"],
                   w["vg_w3"], w["vg_b3"],
                   w["pn_w1"], w["pn_b1"], w["pn_w2"], w["pn_b2"],
                   w["pn_w3"], w["pn_b3"])

    def wspec(a):
        return pl.BlockSpec(a.shape, lambda b: (0, 0))

    in_specs = [pl.BlockSpec((1, S, F), lambda b: (b, 0, 0))]
    in_specs += [wspec(a) for a in weight_args]

    out_shapes = (
        jax.ShapeDtypeStruct((B, S, 3), jnp.float32),        # seed xyz
        jax.ShapeDtypeStruct((B, C, S), jnp.float32),        # seed features (B,C,S)
        jax.ShapeDtypeStruct((B, S, 3), jnp.float32),        # vote xyz
        jax.ShapeDtypeStruct((B, C, S), jnp.float32),        # vote features (B,C,S)
        jax.ShapeDtypeStruct((B, P, 3), jnp.float32),        # aggregated vote xyz
        jax.ShapeDtypeStruct((B, out_dim, P), jnp.float32),  # proposal scores (B,out,P)
        jax.ShapeDtypeStruct((B, P, 3), jnp.float32),        # center
    )
    out_specs = [
        pl.BlockSpec((1, S, 3), lambda b: (b, 0, 0)),
        pl.BlockSpec((1, C, S), lambda b: (b, 0, 0)),
        pl.BlockSpec((1, S, 3), lambda b: (b, 0, 0)),
        pl.BlockSpec((1, C, S), lambda b: (b, 0, 0)),
        pl.BlockSpec((1, P, 3), lambda b: (b, 0, 0)),
        pl.BlockSpec((1, out_dim, P), lambda b: (b, 0, 0)),
        pl.BlockSpec((1, P, 3), lambda b: (b, 0, 0)),
    ]

    return pl.pallas_call(
        kernel,
        out_shape=out_shapes,
        grid_spec=pltpu.PrefetchScalarGridSpec(
            num_scalar_prefetch=0,
            grid=(B,),
            in_specs=in_specs,
            out_specs=out_specs,
        ),
        compiler_params=pltpu.CompilerParams(
            dimension_semantics=("parallel",)),   # 2 TCs on v7x; serial loop on v5e/v6e
    )(inputs_rs, *weight_args)


# ---------------------------------------------------------------------------
# Parameter construction (deterministic, synthetic; BN folded, heads packed)
# ---------------------------------------------------------------------------

def make_params(key, input_feature_dim=0, seed_feat_dim=128, hidden=128,
                out_dim=5, out_pad=128):
    cin = 3 + input_feature_dim
    C = seed_feat_dim
    ks = jax.random.split(key, 16)
    n = lambda k, shp, sc=0.05: (sc * jax.random.normal(k, shp)).astype(jnp.float32)
    bf = lambda a: a.astype(jnp.bfloat16)

    # raw (PyTorch-equivalent) parameters
    bb_w1 = n(ks[0], (cin, hidden)); bb_b1 = jnp.zeros((1, hidden), jnp.float32)
    bb_w2 = n(ks[1], (hidden, C));   bb_b2 = jnp.zeros((1, C), jnp.float32)
    vg_w1 = n(ks[2], (C, C)); s1 = 1.0 + n(ks[3], (1, C), 0.01); t1 = n(ks[4], (1, C), 0.01)
    vg_w2 = n(ks[5], (C, C)); s2 = 1.0 + n(ks[6], (1, C), 0.01); t2 = n(ks[7], (1, C), 0.01)
    vg_w3x = n(ks[8], (C, 3));  vg_b3x = n(ks[9], (1, 3), 0.01)
    vg_w3f = n(ks[10], (C, C)); vg_b3f = n(ks[11], (1, C), 0.01)
    pn_w1 = n(ks[12], (C, C)); pn_w2 = n(ks[13], (C, C)); pn_w3 = n(ks[14], (C, out_dim))

    # merged conv3 head: [feature residual | xyz offset | zero pad] (lane-dense)
    w3 = jnp.zeros((C, C + 128), jnp.float32)
    w3 = w3.at[:, :C].set(vg_w3f).at[:, C:C + 3].set(vg_w3x)
    b3 = jnp.zeros((1, C + 128), jnp.float32)
    b3 = b3.at[:, :C].set(vg_b3f).at[:, C:C + 3].set(vg_b3x)
    # lane-padded proposal output head
    pn_w3p = jnp.zeros((C, out_pad), jnp.float32).at[:, :out_dim].set(pn_w3)

    return {
        # backbone per-point MLP  cin -> hidden -> C
        "bb_w1": bb_w1, "bb_b1": bb_b1,
        "bb_w2": bf(bb_w2), "bb_b2": bb_b2,
        # voting module (eval-mode BN scale folded into weights, shift kept)
        "vg_w1": bf(vg_w1 * s1), "vg_t1": t1,
        "vg_w2": bf(vg_w2 * s2), "vg_t2": t2,
        "vg_w3": bf(w3), "vg_b3": b3,
        # proposal head  C -> C -> C -> out_pad (first out_dim lanes valid)
        "pn_w1": bf(pn_w1), "pn_b1": jnp.zeros((1, C), jnp.float32),
        "pn_w2": bf(pn_w2), "pn_b2": jnp.zeros((1, C), jnp.float32),
        "pn_w3": bf(pn_w3p), "pn_b3": jnp.zeros((1, out_pad), jnp.float32),
    }


# ---------------------------------------------------------------------------
# VotePoseNet forward
# ---------------------------------------------------------------------------

def votepose_forward(inputs, params, *, num_seed=64, num_proposal=16, out_dim=5):
    """inputs: (B, N, 3 + input_feature_dim) point cloud (PyTorch convention).
    Returns end_points dict; feature tensors in PyTorch (B, C, N) layout."""
    # TODO(synk): real VotePoseBackbone / VotePoseProposal use PointNet++
    # SA/FP layers with furthest-point-sampling + ball-query grouping; here the
    # backbone is a per-point shared MLP with deterministic strided seed /
    # proposal sub-sampling.
    inputs = inputs.astype(jnp.float32)
    B, N, cin = inputs.shape
    assert N % num_seed == 0, "num_seed must evenly divide N"
    assert num_seed % num_proposal == 0, "num_proposal must evenly divide num_seed"
    seed_stride = N // num_seed

    # Free contiguous reshape: row i, lanes [0:cin] == original point i*seed_stride.
    inputs_rs = inputs.reshape(B, num_seed, seed_stride * cin)

    (seed_xyz, seed_feat_t, vote_xyz, vote_feat_t,
     agg_xyz, scores_t, center) = _fused_forward_call(
        inputs_rs, params, cin=cin, num_proposal=num_proposal, out_dim=out_dim)

    # Constant index arrays (folded at compile time under jit).
    seed_inds = jnp.broadcast_to(
        jnp.arange(0, N, seed_stride, dtype=jnp.int32)[None, :], (B, num_seed))
    prop_inds = jnp.broadcast_to(
        jnp.arange(0, num_seed, num_seed // num_proposal, dtype=jnp.int32)[None, :],
        (B, num_proposal))

    return {
        "fp1_xyz": seed_xyz,
        "fp1_features": seed_feat_t,            # (B, 128, num_seed)
        "fp1_inds": seed_inds,
        "seed_inds": seed_inds,
        "seed_xyz": seed_xyz,
        "seed_features": seed_feat_t,
        "vote_xyz": vote_xyz,                   # (B, num_seed, 3)
        "vote_features": vote_feat_t,           # (B, 128, num_seed), unit L2 over dim 1
        "aggregated_vote_xyz": agg_xyz,         # (B, num_proposal, 3)
        "aggregated_vote_inds": prop_inds,
        "proposal_scores": scores_t,            # (B, out_dim, num_proposal)
        "center": center,                       # (B, num_proposal, 3)
    }


# ---------------------------------------------------------------------------
# Main
# ---------------------------------------------------------------------------

if __name__ == "__main__":
    B, N, INPUT_FEATURE_DIM = 2, 256, 0
    NUM_SEED, NUM_PROPOSAL, OUT_DIM = 64, 16, 5

    key = jax.random.PRNGKey(0)
    k_in, k_par = jax.random.split(key)
    point_clouds = jax.random.normal(k_in, (B, N, 3 + INPUT_FEATURE_DIM), dtype=jnp.float32)
    params = make_params(k_par, input_feature_dim=INPUT_FEATURE_DIM, out_dim=OUT_DIM)

    fwd = jax.jit(lambda x: votepose_forward(x, params,
                                             num_seed=NUM_SEED,
                                             num_proposal=NUM_PROPOSAL,
                                             out_dim=OUT_DIM))
    end_points = fwd(point_clouds)
    jax.block_until_ready(end_points)

    # light sanity checks
    assert end_points["vote_xyz"].shape == (B, NUM_SEED, 3)
    assert end_points["vote_features"].shape == (B, 128, NUM_SEED)
    # vote features are unit-norm over the channel axis (dim=1, PyTorch convention)
    norms = jnp.linalg.norm(end_points["vote_features"], axis=1)
    assert jnp.allclose(norms, 1.0, atol=2e-3)
    assert end_points["proposal_scores"].shape == (B, OUT_DIM, NUM_PROPOSAL)
    assert end_points["center"].shape == (B, NUM_PROPOSAL, 3)
    assert bool(jnp.all(jnp.isfinite(end_points["proposal_scores"])))

    print("KERNEL_OK")
</pallas_src>

<mosaic_0001>
module attributes {stable_mosaic.version = 11 : i64} {
  func.func @kernel(%arg0: i32, %arg1: memref<1x64x12xf32, #tpu.memory_space<vmem>>, %arg2: memref<3x128xf32, #tpu.memory_space<vmem>>, %arg3: memref<1x128xf32, #tpu.memory_space<vmem>>, %arg4: memref<128x128xbf16, #tpu.memory_space<vmem>>, %arg5: memref<1x128xf32, #tpu.memory_space<vmem>>, %arg6: memref<128x128xbf16, #tpu.memory_space<vmem>>, %arg7: memref<1x128xf32, #tpu.memory_space<vmem>>, %arg8: memref<128x128xbf16, #tpu.memory_space<vmem>>, %arg9: memref<1x128xf32, #tpu.memory_space<vmem>>, %arg10: memref<128x256xbf16, #tpu.memory_space<vmem>>, %arg11: memref<1x256xf32, #tpu.memory_space<vmem>>, %arg12: memref<128x128xbf16, #tpu.memory_space<vmem>>, %arg13: memref<1x128xf32, #tpu.memory_space<vmem>>, %arg14: memref<128x128xbf16, #tpu.memory_space<vmem>>, %arg15: memref<1x128xf32, #tpu.memory_space<vmem>>, %arg16: memref<128x128xbf16, #tpu.memory_space<vmem>>, %arg17: memref<1x128xf32, #tpu.memory_space<vmem>>, %arg18: memref<1x64x3xf32, #tpu.memory_space<vmem>>, %arg19: memref<1x128x64xf32, #tpu.memory_space<vmem>>, %arg20: memref<1x64x3xf32, #tpu.memory_space<vmem>>, %arg21: memref<1x128x64xf32, #tpu.memory_space<vmem>>, %arg22: memref<1x16x3xf32, #tpu.memory_space<vmem>>, %arg23: memref<1x5x16xf32, #tpu.memory_space<vmem>>, %arg24: memref<1x16x3xf32, #tpu.memory_space<vmem>>) attributes {dimension_semantics = [#tpu.dimension_semantics<parallel>], iteration_bounds = array<i64: 2>, scalar_prefetch = 0 : i64, scratch_operands = 0 : i64, tpu.core_type = #tpu.core_type<tc>, window_params = [{transform_indices = @transform_0, window_bounds = array<i64: 1, 64, 12>}, {pipeline_mode = #tpu.pipeline_mode<synchronous>, transform_indices = @transform_1, window_bounds = array<i64: 3, 128>}, {pipeline_mode = #tpu.pipeline_mode<synchronous>, transform_indices = @transform_2, window_bounds = array<i64: 1, 128>}, {pipeline_mode = #tpu.pipeline_mode<synchronous>, transform_indices = @transform_3, window_bounds = array<i64: 128, 128>}, {pipeline_mode = #tpu.pipeline_mode<synchronous>, transform_indices = @transform_4, window_bounds = array<i64: 1, 128>}, {pipeline_mode = #tpu.pipeline_mode<synchronous>, transform_indices = @transform_5, window_bounds = array<i64: 128, 128>}, {pipeline_mode = #tpu.pipeline_mode<synchronous>, transform_indices = @transform_6, window_bounds = array<i64: 1, 128>}, {pipeline_mode = #tpu.pipeline_mode<synchronous>, transform_indices = @transform_7, window_bounds = array<i64: 128, 128>}, {pipeline_mode = #tpu.pipeline_mode<synchronous>, transform_indices = @transform_8, window_bounds = array<i64: 1, 128>}, {pipeline_mode = #tpu.pipeline_mode<synchronous>, transform_indices = @transform_9, window_bounds = array<i64: 128, 256>}, {pipeline_mode = #tpu.pipeline_mode<synchronous>, transform_indices = @transform_10, window_bounds = array<i64: 1, 256>}, {pipeline_mode = #tpu.pipeline_mode<synchronous>, transform_indices = @transform_11, window_bounds = array<i64: 128, 128>}, {pipeline_mode = #tpu.pipeline_mode<synchronous>, transform_indices = @transform_12, window_bounds = array<i64: 1, 128>}, {pipeline_mode = #tpu.pipeline_mode<synchronous>, transform_indices = @transform_13, window_bounds = array<i64: 128, 128>}, {pipeline_mode = #tpu.pipeline_mode<synchronous>, transform_indices = @transform_14, window_bounds = array<i64: 1, 128>}, {pipeline_mode = #tpu.pipeline_mode<synchronous>, transform_indices = @transform_15, window_bounds = array<i64: 128, 128>}, {pipeline_mode = #tpu.pipeline_mode<synchronous>, transform_indices = @transform_16, window_bounds = array<i64: 1, 128>}, {transform_indices = @transform_17, window_bounds = array<i64: 1, 64, 3>}, {transform_indices = @transform_18, window_bounds = array<i64: 1, 128, 64>}, {transform_indices = @transform_19, window_bounds = array<i64: 1, 64, 3>}, {transform_indices = @transform_20, window_bounds = array<i64: 1, 128, 64>}, {transform_indices = @transform_21, window_bounds = array<i64: 1, 16, 3>}, {transform_indices = @transform_22, window_bounds = array<i64: 1, 5, 16>}, {transform_indices = @transform_23, window_bounds = array<i64: 1, 16, 3>}]} {
    %c0 = arith.constant 0 : index
    %c0_0 = arith.constant 0 : index
    %c0_1 = arith.constant 0 : index
    %0 = vector.load %arg1[%c0, %c0_0, %c0_1] : memref<1x64x12xf32, #tpu.memory_space<vmem>>, vector<1x64x12xf32>
    %1 = vector.shape_cast %0 : vector<1x64x12xf32> to vector<64x12xf32>
    %2 = vector.extract_strided_slice %1 {offsets = [0, 0], sizes = [64, 3], strides = [1, 1]} : vector<64x12xf32> to vector<64x3xf32>
    %3 = vector.extract_strided_slice %1 {offsets = [0, 0], sizes = [64, 3], strides = [1, 1]} : vector<64x12xf32> to vector<64x3xf32>
    %c0_2 = arith.constant 0 : index
    %c0_3 = arith.constant 0 : index
    %c0_4 = arith.constant 0 : index
    %4 = vector.load %arg18[%c0_2, %c0_3, %c0_4] : memref<1x64x3xf32, #tpu.memory_space<vmem>>, vector<1x64x3xf32>
    %5 = vector.shape_cast %4 : vector<1x64x3xf32> to vector<64x3xf32>
    %6 = vector.shape_cast %3 : vector<64x3xf32> to vector<1x64x3xf32>
    tpu.vector_store %arg18[%c0_2, %c0_3, %c0_4], %6 {strides = array<i32>} : memref<1x64x3xf32, #tpu.memory_space<vmem>>, vector<1x64x3xf32>,
    %7 = vector.extract_strided_slice %2 {offsets = [0, 0], sizes = [64, 1], strides = [1, 1]} : vector<64x3xf32> to vector<64x1xf32>
    %c0_5 = arith.constant 0 : index
    %c0_6 = arith.constant 0 : index
    %8 = vector.load %arg2[%c0_5, %c0_6] : memref<3x128xf32, #tpu.memory_space<vmem>>, vector<1x128xf32>
    %9 = vector.broadcast %7 : vector<64x1xf32> to vector<64x128xf32>
    %10 = vector.broadcast %8 : vector<1x128xf32> to vector<64x128xf32>
    %11 = arith.mulf %9, %10 : vector<64x128xf32>
    %12 = vector.extract_strided_slice %2 {offsets = [0, 1], sizes = [64, 1], strides = [1, 1]} : vector<64x3xf32> to vector<64x1xf32>
    %c1 = arith.constant 1 : index
    %c0_7 = arith.constant 0 : index
    %13 = vector.load %arg2[%c1, %c0_7] : memref<3x128xf32, #tpu.memory_space<vmem>>, vector<1x128xf32>
    %14 = vector.broadcast %12 : vector<64x1xf32> to vector<64x128xf32>
    %15 = vector.broadcast %13 : vector<1x128xf32> to vector<64x128xf32>
    %16 = arith.mulf %14, %15 : vector<64x128xf32>
    %17 = arith.addf %11, %16 : vector<64x128xf32>
    %18 = vector.extract_strided_slice %2 {offsets = [0, 2], sizes = [64, 1], strides = [1, 1]} : vector<64x3xf32> to vector<64x1xf32>
    %c2 = arith.constant 2 : index
    %c0_8 = arith.constant 0 : index
    %19 = vector.load %arg2[%c2, %c0_8] : memref<3x128xf32, #tpu.memory_space<vmem>>, vector<1x128xf32>
    %20 = vector.broadcast %18 : vector<64x1xf32> to vector<64x128xf32>
    %21 = vector.broadcast %19 : vector<1x128xf32> to vector<64x128xf32>
    %22 = arith.mulf %20, %21 : vector<64x128xf32>
    %23 = arith.addf %17, %22 : vector<64x128xf32>
    %c0_9 = arith.constant 0 : index
    %c0_10 = arith.constant 0 : index
    %24 = vector.load %arg3[%c0_9, %c0_10] : memref<1x128xf32, #tpu.memory_space<vmem>>, vector<1x128xf32>
    %25 = vector.broadcast %24 : vector<1x128xf32> to vector<64x128xf32>
    %26 = arith.addf %23, %25 : vector<64x128xf32>
    %cst = arith.constant 0.000000e+00 : f32
    %27 = vector.broadcast %cst : f32 to vector<64x128xf32>
    %28 = arith.maximumf %26, %27 : vector<64x128xf32>
    %29 = arith.truncf %28 : vector<64x128xf32> to vector<64x128xbf16>
    %c0_11 = arith.constant 0 : index
    %c0_12 = arith.constant 0 : index
    %30 = vector.load %arg4[%c0_11, %c0_12] : memref<128x128xbf16, #tpu.memory_space<vmem>>, vector<128x128xbf16>
    %cst_13 = arith.constant dense<0.000000e+00> : vector<64x128xf32>
    %31 = tpu.matmul %29, %30, %cst_13 {dimension_numbers = #tpu.dot_dimension_numbers<[1], [0], [0], [1], [0, 0, 1, 1], [], []>} : vector<64x128xbf16>, vector<128x128xbf16>, vector<64x128xf32> -> vector<64x128xf32>
    %c0_14 = arith.constant 0 : index
    %c0_15 = arith.constant 0 : index
    %32 = vector.load %arg5[%c0_14, %c0_15] : memref<1x128xf32, #tpu.memory_space<vmem>>, vector<1x128xf32>
    %33 = vector.broadcast %32 : vector<1x128xf32> to vector<64x128xf32>
    %34 = arith.addf %31, %33 : vector<64x128xf32>
    %cst_16 = arith.constant 0.000000e+00 : f32
    %35 = vector.broadcast %cst_16 : f32 to vector<64x128xf32>
    %36 = arith.maximumf %34, %35 : vector<64x128xf32>
    %37 = tpu.transpose %36, [1, 0] : vector<64x128xf32> -> vector<128x64xf32>
    %c0_17 = arith.constant 0 : index
    %c0_18 = arith.constant 0 : index
    %c0_19 = arith.constant 0 : index
    %38 = vector.load %arg19[%c0_17, %c0_18, %c0_19] : memref<1x128x64xf32, #tpu.memory_space<vmem>>, vector<1x128x64xf32>
    %39 = vector.shape_cast %38 : vector<1x128x64xf32> to vector<128x64xf32>
    %40 = vector.shape_cast %37 : vector<128x64xf32> to vector<1x128x64xf32>
    tpu.vector_store %arg19[%c0_17, %c0_18, %c0_19], %40 {strides = array<i32>} : memref<1x128x64xf32, #tpu.memory_space<vmem>>, vector<1x128x64xf32>,
    %41 = arith.truncf %36 : vector<64x128xf32> to vector<64x128xbf16>
    %c0_20 = arith.constant 0 : index
    %c0_21 = arith.constant 0 : index
    %42 = vector.load %arg6[%c0_20, %c0_21] : memref<128x128xbf16, #tpu.memory_space<vmem>>, vector<128x128xbf16>
    %cst_22 = arith.constant dense<0.000000e+00> : vector<64x128xf32>
    %43 = tpu.matmul %41, %42, %cst_22 {dimension_numbers = #tpu.dot_dimension_numbers<[1], [0], [0], [1], [0, 0, 1, 1], [], []>} : vector<64x128xbf16>, vector<128x128xbf16>, vector<64x128xf32> -> vector<64x128xf32>
    %c0_23 = arith.constant 0 : index
    %c0_24 = arith.constant 0 : index
    %44 = vector.load %arg7[%c0_23, %c0_24] : memref<1x128xf32, #tpu.memory_space<vmem>>, vector<1x128xf32>
    %45 = vector.broadcast %44 : vector<1x128xf32> to vector<64x128xf32>
    %46 = arith.addf %43, %45 : vector<64x128xf32>
    %cst_25 = arith.constant 0.000000e+00 : f32
    %47 = vector.broadcast %cst_25 : f32 to vector<64x128xf32>
    %48 = arith.maximumf %46, %47 : vector<64x128xf32>
    %49 = arith.truncf %48 : vector<64x128xf32> to vector<64x128xbf16>
    %c0_26 = arith.constant 0 : index
    %c0_27 = arith.constant 0 : index
    %50 = vector.load %arg8[%c0_26, %c0_27] : memref<128x128xbf16, #tpu.memory_space<vmem>>, vector<128x128xbf16>
    %cst_28 = arith.constant dense<0.000000e+00> : vector<64x128xf32>
    %51 = tpu.matmul %49, %50, %cst_28 {dimension_numbers = #tpu.dot_dimension_numbers<[1], [0], [0], [1], [0, 0, 1, 1], [], []>} : vector<64x128xbf16>, vector<128x128xbf16>, vector<64x128xf32> -> vector<64x128xf32>
    %c0_29 = arith.constant 0 : index
    %c0_30 = arith.constant 0 : index
    %52 = vector.load %arg9[%c0_29, %c0_30] : memref<1x128xf32, #tpu.memory_space<vmem>>, vector<1x128xf32>
    %53 = vector.broadcast %52 : vector<1x128xf32> to vector<64x128xf32>
    %54 = arith.addf %51, %53 : vector<64x128xf32>
    %cst_31 = arith.constant 0.000000e+00 : f32
    %55 = vector.broadcast %cst_31 : f32 to vector<64x128xf32>
    %56 = arith.maximumf %54, %55 : vector<64x128xf32>
    %57 = arith.truncf %56 : vector<64x128xf32> to vector<64x128xbf16>
    %c0_32 = arith.constant 0 : index
    %c0_33 = arith.constant 0 : index
    %58 = vector.load %arg10[%c0_32, %c0_33] : memref<128x256xbf16, #tpu.memory_space<vmem>>, vector<128x256xbf16>
    %cst_34 = arith.constant dense<0.000000e+00> : vector<64x256xf32>
    %59 = tpu.matmul %57, %58, %cst_34 {dimension_numbers = #tpu.dot_dimension_numbers<[1], [0], [0], [1], [0, 0, 1, 1], [], []>} : vector<64x128xbf16>, vector<128x256xbf16>, vector<64x256xf32> -> vector<64x256xf32>
    %c0_35 = arith.constant 0 : index
    %c0_36 = arith.constant 0 : index
    %60 = vector.load %arg11[%c0_35, %c0_36] : memref<1x256xf32, #tpu.memory_space<vmem>>, vector<1x256xf32>
    %61 = vector.broadcast %60 : vector<1x256xf32> to vector<64x256xf32>
    %62 = arith.addf %59, %61 : vector<64x256xf32>
    %63 = vector.extract_strided_slice %62 {offsets = [0, 0], sizes = [64, 128], strides = [1, 1]} : vector<64x256xf32> to vector<64x128xf32>
    %64 = vector.extract_strided_slice %62 {offsets = [0, 128], sizes = [64, 3], strides = [1, 1]} : vector<64x256xf32> to vector<64x3xf32>
    %65 = arith.addf %3, %64 : vector<64x3xf32>
    %c0_37 = arith.constant 0 : index
    %c0_38 = arith.constant 0 : index
    %c0_39 = arith.constant 0 : index
    %66 = vector.load %arg20[%c0_37, %c0_38, %c0_39] : memref<1x64x3xf32, #tpu.memory_space<vmem>>, vector<1x64x3xf32>
    %67 = vector.shape_cast %66 : vector<1x64x3xf32> to vector<64x3xf32>
    %68 = vector.shape_cast %65 : vector<64x3xf32> to vector<1x64x3xf32>
    tpu.vector_store %arg20[%c0_37, %c0_38, %c0_39], %68 {strides = array<i32>} : memref<1x64x3xf32, #tpu.memory_space<vmem>>, vector<1x64x3xf32>,
    %69 = arith.addf %36, %63 : vector<64x128xf32>
    %70 = arith.mulf %69, %69 : vector<64x128xf32>
    %cst_40 = arith.constant dense<0.000000e+00> : vector<64xf32>
    %71 = vector.multi_reduction <add>, %70, %cst_40 [1] : vector<64x128xf32> to vector<64xf32>
    %72 = vector.shape_cast %71 : vector<64xf32> to vector<64x1xf32>
    %cst_41 = arith.constant 9.99999996E-13 : f32
    %73 = vector.broadcast %cst_41 : f32 to vector<64x1xf32>
    %74 = arith.addf %72, %73 : vector<64x1xf32>
    %75 = math.rsqrt %74 : vector<64x1xf32>
    %76 = vector.broadcast %75 : vector<64x1xf32> to vector<64x128xf32>
    %77 = arith.mulf %69, %76 : vector<64x128xf32>
    %78 = tpu.transpose %77, [1, 0] : vector<64x128xf32> -> vector<128x64xf32>
    %c0_42 = arith.constant 0 : index
    %c0_43 = arith.constant 0 : index
    %c0_44 = arith.constant 0 : index
    %79 = vector.load %arg21[%c0_42, %c0_43, %c0_44] : memref<1x128x64xf32, #tpu.memory_space<vmem>>, vector<1x128x64xf32>
    %80 = vector.shape_cast %79 : vector<1x128x64xf32> to vector<128x64xf32>
    %81 = vector.shape_cast %78 : vector<128x64xf32> to vector<1x128x64xf32>
    tpu.vector_store %arg21[%c0_42, %c0_43, %c0_44], %81 {strides = array<i32>} : memref<1x128x64xf32, #tpu.memory_space<vmem>>, vector<1x128x64xf32>,
    %82 = tpu.iota {dimensions = array<i32: 0>} : vector<16x64xi32>
    %83 = tpu.iota {dimensions = array<i32: 1>} : vector<16x64xi32>
    %c4_i32 = arith.constant 4 : i32
    %84 = vector.broadcast %c4_i32 : i32 to vector<16x64xi32>
    %85 = arith.muli %82, %84 : vector<16x64xi32>
    %86 = arith.cmpi eq, %83, %85 : vector<16x64xi32>
    %87 = arith.extui %86 : vector<16x64xi1> to vector<16x64xi32>
    %88 = arith.sitofp %87 : vector<16x64xi32> to vector<16x64xf32>
    %cst_45 = arith.constant dense<0.000000e+00> : vector<16x3xf32>
    %89 = tpu.matmul %88, %65, %cst_45 {dimension_numbers = #tpu.dot_dimension_numbers<[1], [0], [0], [1], [0, 0, 1, 1], [], []>} : vector<16x64xf32>, vector<64x3xf32>, vector<16x3xf32> -> vector<16x3xf32>
    %cst_46 = arith.constant dense<0.000000e+00> : vector<16x128xf32>
    %90 = tpu.matmul %88, %77, %cst_46 {dimension_numbers = #tpu.dot_dimension_numbers<[1], [0], [0], [1], [0, 0, 1, 1], [], []>} : vector<16x64xf32>, vector<64x128xf32>, vector<16x128xf32> -> vector<16x128xf32>
    %91 = arith.truncf %90 : vector<16x128xf32> to vector<16x128xbf16>
    %c0_47 = arith.constant 0 : index
    %c0_48 = arith.constant 0 : index
    %92 = vector.load %arg12[%c0_47, %c0_48] : memref<128x128xbf16, #tpu.memory_space<vmem>>, vector<128x128xbf16>
    %cst_49 = arith.constant dense<0.000000e+00> : vector<16x128xf32>
    %93 = tpu.matmul %91, %92, %cst_49 {dimension_numbers = #tpu.dot_dimension_numbers<[1], [0], [0], [1], [0, 0, 1, 1], [], []>} : vector<16x128xbf16>, vector<128x128xbf16>, vector<16x128xf32> -> vector<16x128xf32>
    %c0_50 = arith.constant 0 : index
    %c0_51 = arith.constant 0 : index
    %94 = vector.load %arg13[%c0_50, %c0_51] : memref<1x128xf32, #tpu.memory_space<vmem>>, vector<1x128xf32>
    %95 = vector.broadcast %94 : vector<1x128xf32> to vector<16x128xf32>
    %96 = arith.addf %93, %95 : vector<16x128xf32>
    %cst_52 = arith.constant 0.000000e+00 : f32
    %97 = vector.broadcast %cst_52 : f32 to vector<16x128xf32>
    %98 = arith.maximumf %96, %97 : vector<16x128xf32>
    %99 = arith.truncf %98 : vector<16x128xf32> to vector<16x128xbf16>
    %c0_53 = arith.constant 0 : index
    %c0_54 = arith.constant 0 : index
    %100 = vector.load %arg14[%c0_53, %c0_54] : memref<128x128xbf16, #tpu.memory_space<vmem>>, vector<128x128xbf16>
    %cst_55 = arith.constant dense<0.000000e+00> : vector<16x128xf32>
    %101 = tpu.matmul %99, %100, %cst_55 {dimension_numbers = #tpu.dot_dimension_numbers<[1], [0], [0], [1], [0, 0, 1, 1], [], []>} : vector<16x128xbf16>, vector<128x128xbf16>, vector<16x128xf32> -> vector<16x128xf32>
    %c0_56 = arith.constant 0 : index
    %c0_57 = arith.constant 0 : index
    %102 = vector.load %arg15[%c0_56, %c0_57] : memref<1x128xf32, #tpu.memory_space<vmem>>, vector<1x128xf32>
    %103 = vector.broadcast %102 : vector<1x128xf32> to vector<16x128xf32>
    %104 = arith.addf %101, %103 : vector<16x128xf32>
    %cst_58 = arith.constant 0.000000e+00 : f32
    %105 = vector.broadcast %cst_58 : f32 to vector<16x128xf32>
    %106 = arith.maximumf %104, %105 : vector<16x128xf32>
    %107 = arith.truncf %106 : vector<16x128xf32> to vector<16x128xbf16>
    %c0_59 = arith.constant 0 : index
    %c0_60 = arith.constant 0 : index
    %108 = vector.load %arg16[%c0_59, %c0_60] : memref<128x128xbf16, #tpu.memory_space<vmem>>, vector<128x128xbf16>
    %cst_61 = arith.constant dense<0.000000e+00> : vector<16x128xf32>
    %109 = tpu.matmul %107, %108, %cst_61 {dimension_numbers = #tpu.dot_dimension_numbers<[1], [0], [0], [1], [0, 0, 1, 1], [], []>} : vector<16x128xbf16>, vector<128x128xbf16>, vector<16x128xf32> -> vector<16x128xf32>
    %c0_62 = arith.constant 0 : index
    %c0_63 = arith.constant 0 : index
    %110 = vector.load %arg17[%c0_62, %c0_63] : memref<1x128xf32, #tpu.memory_space<vmem>>, vector<1x128xf32>
    %111 = vector.broadcast %110 : vector<1x128xf32> to vector<16x128xf32>
    %112 = arith.addf %109, %111 : vector<16x128xf32>
    %c0_64 = arith.constant 0 : index
    %c0_65 = arith.constant 0 : index
    %c0_66 = arith.constant 0 : index
    %113 = vector.load %arg22[%c0_64, %c0_65, %c0_66] : memref<1x16x3xf32, #tpu.memory_space<vmem>>, vector<1x16x3xf32>
    %114 = vector.shape_cast %113 : vector<1x16x3xf32> to vector<16x3xf32>
    %115 = vector.shape_cast %89 : vector<16x3xf32> to vector<1x16x3xf32>
    tpu.vector_store %arg22[%c0_64, %c0_65, %c0_66], %115 {strides = array<i32>} : memref<1x16x3xf32, #tpu.memory_space<vmem>>, vector<1x16x3xf32>,
    %116 = tpu.transpose %112, [1, 0] : vector<16x128xf32> -> vector<128x16xf32>
    %117 = vector.extract_strided_slice %116 {offsets = [0, 0], sizes = [5, 16], strides = [1, 1]} : vector<128x16xf32> to vector<5x16xf32>
    %c0_67 = arith.constant 0 : index
    %c0_68 = arith.constant 0 : index
    %c0_69 = arith.constant 0 : index
    %118 = vector.load %arg23[%c0_67, %c0_68, %c0_69] : memref<1x5x16xf32, #tpu.memory_space<vmem>>, vector<1x5x16xf32>
    %119 = vector.shape_cast %118 : vector<1x5x16xf32> to vector<5x16xf32>
    %120 = vector.shape_cast %117 : vector<5x16xf32> to vector<1x5x16xf32>
    tpu.vector_store %arg23[%c0_67, %c0_68, %c0_69], %120 {strides = array<i32>} : memref<1x5x16xf32, #tpu.memory_space<vmem>>, vector<1x5x16xf32>,
    %121 = vector.extract_strided_slice %112 {offsets = [0, 0], sizes = [16, 3], strides = [1, 1]} : vector<16x128xf32> to vector<16x3xf32>
    %122 = arith.addf %89, %121 : vector<16x3xf32>
    %c0_70 = arith.constant 0 : index
    %c0_71 = arith.constant 0 : index
    %c0_72 = arith.constant 0 : index
    %123 = vector.load %arg24[%c0_70, %c0_71, %c0_72] : memref<1x16x3xf32, #tpu.memory_space<vmem>>, vector<1x16x3xf32>
    %124 = vector.shape_cast %123 : vector<1x16x3xf32> to vector<16x3xf32>
    %125 = vector.shape_cast %122 : vector<16x3xf32> to vector<1x16x3xf32>
    tpu.vector_store %arg24[%c0_70, %c0_71, %c0_72], %125 {strides = array<i32>} : memref<1x16x3xf32, #tpu.memory_space<vmem>>, vector<1x16x3xf32>,
    return
  }
  func.func @transform_0(%arg0: i32) -> (i32, i32, i32) {
    %c0_i32 = arith.constant 0 : i32
    %c0_i32_0 = arith.constant 0 : i32
    %c0_i32_1 = arith.constant 0 : i32
    return %arg0, %c0_i32, %c0_i32_0 : i32, i32, i32
  }
  func.func @transform_1(%arg0: i32) -> (i32, i32) {
    %c0_i32 = arith.constant 0 : i32
    %c0_i32_0 = arith.constant 0 : i32
    %c0_i32_1 = arith.constant 0 : i32
    return %c0_i32, %c0_i32_0 : i32, i32
  }
  func.func @transform_2(%arg0: i32) -> (i32, i32) {
    %c0_i32 = arith.constant 0 : i32
    %c0_i32_0 = arith.constant 0 : i32
    %c0_i32_1 = arith.constant 0 : i32
    return %c0_i32, %c0_i32_0 : i32, i32
  }
  func.func @transform_3(%arg0: i32) -> (i32, i32) {
    %c0_i32 = arith.constant 0 : i32
    %c0_i32_0 = arith.constant 0 : i32
    %c0_i32_1 = arith.constant 0 : i32
    return %c0_i32, %c0_i32_0 : i32, i32
  }
  func.func @transform_4(%arg0: i32) -> (i32, i32) {
    %c0_i32 = arith.constant 0 : i32
    %c0_i32_0 = arith.constant 0 : i32
    %c0_i32_1 = arith.constant 0 : i32
    return %c0_i32, %c0_i32_0 : i32, i32
  }
  func.func @transform_5(%arg0: i32) -> (i32, i32) {
    %c0_i32 = arith.constant 0 : i32
    %c0_i32_0 = arith.constant 0 : i32
    %c0_i32_1 = arith.constant 0 : i32
    return %c0_i32, %c0_i32_0 : i32, i32
  }
  func.func @transform_6(%arg0: i32) -> (i32, i32) {
    %c0_i32 = arith.constant 0 : i32
    %c0_i32_0 = arith.constant 0 : i32
    %c0_i32_1 = arith.constant 0 : i32
    return %c0_i32, %c0_i32_0 : i32, i32
  }
  func.func @transform_7(%arg0: i32) -> (i32, i32) {
    %c0_i32 = arith.constant 0 : i32
    %c0_i32_0 = arith.constant 0 : i32
    %c0_i32_1 = arith.constant 0 : i32
    return %c0_i32, %c0_i32_0 : i32, i32
  }
  func.func @transform_8(%arg0: i32) -> (i32, i32) {
    %c0_i32 = arith.constant 0 : i32
    %c0_i32_0 = arith.constant 0 : i32
    %c0_i32_1 = arith.constant 0 : i32
    return %c0_i32, %c0_i32_0 : i32, i32
  }
  func.func @transform_9(%arg0: i32) -> (i32, i32) {
    %c0_i32 = arith.constant 0 : i32
    %c0_i32_0 = arith.constant 0 : i32
    %c0_i32_1 = arith.constant 0 : i32
    return %c0_i32, %c0_i32_0 : i32, i32
  }
  func.func @transform_10(%arg0: i32) -> (i32, i32) {
    %c0_i32 = arith.constant 0 : i32
    %c0_i32_0 = arith.constant 0 : i32
    %c0_i32_1 = arith.constant 0 : i32
    return %c0_i32, %c0_i32_0 : i32, i32
  }
  func.func @transform_11(%arg0: i32) -> (i32, i32) {
    %c0_i32 = arith.constant 0 : i32
    %c0_i32_0 = arith.constant 0 : i32
    %c0_i32_1 = arith.constant 0 : i32
    return %c0_i32, %c0_i32_0 : i32, i32
  }
  func.func @transform_12(%arg0: i32) -> (i32, i32) {
    %c0_i32 = arith.constant 0 : i32
    %c0_i32_0 = arith.constant 0 : i32
    %c0_i32_1 = arith.constant 0 : i32
    return %c0_i32, %c0_i32_0 : i32, i32
  }
  func.func @transform_13(%arg0: i32) -> (i32, i32) {
    %c0_i32 = arith.constant 0 : i32
    %c0_i32_0 = arith.constant 0 : i32
    %c0_i32_1 = arith.constant 0 : i32
    return %c0_i32, %c0_i32_0 : i32, i32
  }
  func.func @transform_14(%arg0: i32) -> (i32, i32) {
    %c0_i32 = arith.constant 0 : i32
    %c0_i32_0 = arith.constant 0 : i32
    %c0_i32_1 = arith.constant 0 : i32
    return %c0_i32, %c0_i32_0 : i32, i32
  }
  func.func @transform_15(%arg0: i32) -> (i32, i32) {
    %c0_i32 = arith.constant 0 : i32
    %c0_i32_0 = arith.constant 0 : i32
    %c0_i32_1 = arith.constant 0 : i32
    return %c0_i32, %c0_i32_0 : i32, i32
  }
  func.func @transform_16(%arg0: i32) -> (i32, i32) {
    %c0_i32 = arith.constant 0 : i32
    %c0_i32_0 = arith.constant 0 : i32
    %c0_i32_1 = arith.constant 0 : i32
    return %c0_i32, %c0_i32_0 : i32, i32
  }
  func.func @transform_17(%arg0: i32) -> (i32, i32, i32) {
    %c0_i32 = arith.constant 0 : i32
    %c0_i32_0 = arith.constant 0 : i32
    %c0_i32_1 = arith.constant 0 : i32
    return %arg0, %c0_i32, %c0_i32_0 : i32, i32, i32
  }
  func.func @transform_18(%arg0: i32) -> (i32, i32, i32) {
    %c0_i32 = arith.constant 0 : i32
    %c0_i32_0 = arith.constant 0 : i32
    %c0_i32_1 = arith.constant 0 : i32
    return %arg0, %c0_i32, %c0_i32_0 : i32, i32, i32
  }
  func.func @transform_19(%arg0: i32) -> (i32, i32, i32) {
    %c0_i32 = arith.constant 0 : i32
    %c0_i32_0 = arith.constant 0 : i32
    %c0_i32_1 = arith.constant 0 : i32
    return %arg0, %c0_i32, %c0_i32_0 : i32, i32, i32
  }
  func.func @transform_20(%arg0: i32) -> (i32, i32, i32) {
    %c0_i32 = arith.constant 0 : i32
    %c0_i32_0 = arith.constant 0 : i32
    %c0_i32_1 = arith.constant 0 : i32
    return %arg0, %c0_i32, %c0_i32_0 : i32, i32, i32
  }
  func.func @transform_21(%arg0: i32) -> (i32, i32, i32) {
    %c0_i32 = arith.constant 0 : i32
    %c0_i32_0 = arith.constant 0 : i32
    %c0_i32_1 = arith.constant 0 : i32
    return %arg0, %c0_i32, %c0_i32_0 : i32, i32, i32
  }
  func.func @transform_22(%arg0: i32) -> (i32, i32, i32) {
    %c0_i32 = arith.constant 0 : i32
    %c0_i32_0 = arith.constant 0 : i32
    %c0_i32_1 = arith.constant 0 : i32
    return %arg0, %c0_i32, %c0_i32_0 : i32, i32, i32
  }
  func.func @transform_23(%arg0: i32) -> (i32, i32, i32) {
    %c0_i32 = arith.constant 0 : i32
    %c0_i32_0 = arith.constant 0 : i32
    %c0_i32_1 = arith.constant 0 : i32
    return %arg0, %c0_i32, %c0_i32_0 : i32, i32, i32
  }
}

</mosaic_0001>

<bundles_post_ra>
// kernel: _lambda_.1
= control target key start
LH: loop header
LB: loop body
LE: loop exit
PB: predicated region body
PF: predicated region fallthrough
CT: control target
= control target key end

     0   :  { %s3832_s0 = inlined_call_operand.vmem [shape: f32[2,64,12], index: 0, kind: input, shape index: {}]   ;;  %s3833_s1 = inlined_call_operand.vmem [shape: f32[3,128], index: 1, kind: input, shape index: {}]   ;;  %s3834_s2 = inlined_call_operand.vmem [shape: f32[1,128], index: 2, kind: input, shape index: {}, may-alias: {2,4,12,14,16}]   ;;  %s3835_s3 = inlined_call_operand.vmem [shape: bf16[128,128], index: 3, kind: input, shape index: {}]   ;;  %s3836_s4 = inlined_call_operand.vmem [shape: f32[1,128], index: 4, kind: input, shape index: {}, may-alias: {2,4,12,14,16}]   ;;  %s3837_s5 = inlined_call_operand.vmem [shape: bf16[128,128], index: 5, kind: input, shape index: {}]   ;;  %s3838_s6 = inlined_call_operand.vmem [shape: f32[1,128], index: 6, kind: input, shape index: {}]   ;;  %s3839_s7 = inlined_call_operand.vmem [shape: bf16[128,128], index: 7, kind: input, shape index: {}]   ;;  %s3840_s8 = inlined_call_operand.vmem [shape: f32[1,128], index: 8, kind: input, shape index: {}]   ;;  %s3841_s9 = inlined_call_operand.vmem [shape: bf16[128,256], index: 9, kind: input, shape index: {}]   ;;  %s3842_s10 = inlined_call_operand.vmem [shape: f32[1,256], index: 10, kind: input, shape index: {}]   ;;  %s3843_s11 = inlined_call_operand.vmem [shape: bf16[128,128], index: 11, kind: input, shape index: {}]   ;;  %s3844_s12 = inlined_call_operand.vmem [shape: f32[1,128], index: 12, kind: input, shape index: {}, may-alias: {2,4,12,14,16}]   ;;  %s3845_s13 = inlined_call_operand.vmem [shape: bf16[128,128], index: 13, kind: input, shape index: {}]   ;;  %s3846_s14 = inlined_call_operand.vmem [shape: f32[1,128], index: 14, kind: input, shape index: {}, may-alias: {2,4,12,14,16}]   ;;  %s3847_s15 = inlined_call_operand.vmem [shape: bf16[128,128], index: 15, kind: input, shape index: {}]   ;;  %s3848_s16 = inlined_call_operand.vmem [shape: f32[1,128], index: 16, kind: input, shape index: {}, may-alias: {2,4,12,14,16}]   ;;  %s3849_s17 = inlined_call_operand.vmem [shape: f32[2,64,3], index: 17, kind: output, shape index: {0}]   ;;  %s3850_s18 = inlined_call_operand.vmem [shape: f32[2,128,64], index: 18, kind: output, shape index: {1}]   ;;  %s3851_s19 = inlined_call_operand.vmem [shape: f32[2,64,3], index: 19, kind: output, shape index: {2}]   ;;  %s3852_s20 = inlined_call_operand.vmem [shape: f32[2,128,64], index: 20, kind: output, shape index: {3}]   ;;  %s3853_s21 = inlined_call_operand.vmem [shape: f32[2,16,3], index: 21, kind: output, shape index: {4}]   ;;  %s3854_s22 = inlined_call_operand.vmem [shape: f32[2,5,16], index: 22, kind: output, shape index: {5}]   ;;  %s3855_s23 = inlined_call_operand.vmem [shape: f32[2,16,3], index: 23, kind: output, shape index: {6}]  }
   0x1   :  { %3861 = sst [smem:[#allocation2_spill]] %s3832_s0 }
   0x2   :  { %3862 = sst [smem:[#allocation3_spill]] %s3833_s1 }
   0x3   :  { %3863 = sst [smem:[#allocation4_spill]] %s3834_s2 }
   0x4   :  { %3864 = sst [smem:[#allocation5_spill]] %s3835_s3 }
   0x5   :  { %3865 = sst [smem:[#allocation6_spill]] %s3836_s4  ;;  %s3192_s4 = smov 0  }
   0x6   :  { %3866 = sst [smem:[#allocation7_spill]] %s3837_s5 }
   0x7   :  { %3867 = sst [smem:[#allocation8_spill]] %s3838_s6 }
   0x8   :  { %3868 = sst [smem:[#allocation9_spill]] %s3839_s7 }
   0x9   :  { %3869 = sst [smem:[#allocation10_spill]] %s3849_s17 }
   0xa LB: > { %s2583_s30 = sadd.s32 4294967295, %s3065_s4   ;;  %p2587_p0 = scmp.ge.s32.totalorder %s3065_s4, 1  ;;  %s3065_s4 = sphi %s3192_s4, %s34_s4  }
   0xb   : > { %p650_p1 = scmp.lt.s32.totalorder %s3065_s4, 3 }
   0xd   : > { %p651_p2 = pnand %p2587_p0, %p650_p1 }
   0xe   : > { %p743_p3 = scmp.lt.s32.totalorder (!%p651_p2), %s2583_s30, 1  ;;  %s3870_s1 = sld [smem:[#allocation2_spill]] (!%p651_p2) }
   0xf   : > { %654 = sbr.rel (%p651_p2) target bundleno = 2142 (0x85e), region = 88  ;;  %s3871_s17 = sld [smem:[#allocation10_spill]] (!%p651_p2) }
  0x10   : > { %s3872_s29 = sld [smem:[#allocation5_spill]] (!%p651_p2) }
  0x11   : > { %s3874_s2 = sld [smem:[#allocation3_spill]] (!%p651_p2) }
  0x12   : > { %s3875_s25 = sld [smem:[#allocation4_spill]] (!%p651_p2) }
  0x13   : > { %s3877_s6 = sld [smem:[#allocation6_spill]] (!%p651_p2) }
  0x14   : > { %v3067_v0 = vmov 2   ;;  %v3068_v1 = vmov 1   ;;  %s3880_s30 = smov (!%p743_p3, %s2583_s30), 1  ;;  %vm791_vm0 = vcmask 23552   ;;  %v3069_v12 = vmov 0  }
  0x15   : > { %2962 = vset.pattern.permute.xlu0 %v3067_v0  ;;  %2958 = vset.pattern.permute.xlu1 %v3068_v1  ;;  %s3205_s24 = sshll.u32 %s3880_s30, 6  ;;  %vm1162_vm1 = vcmask 523264   ;;  %vm3071_vm4 = vmmov 0   ;;  %s2687_s28 = sshll.u32 %s3880_s30, 7  ;;  %vm2326_vm5 = vcmask 126976  }
  0x16   : > { %s747_s26 = scalar_lea.vmem %s3870_s1, %s3205_s24  ;;  %s752_s27 = scalar_lea.vmem %s3871_s17, %s3205_s24  ;;  %v2971_v10 = vld [vmem:[%s3872_s29 + $0x38] sm:$0xff]   ;;  %v2972_v11 = vld [vmem:[%s3872_s29 + $0x30] sm:$0xff]   ;;  %v2973_v13 = vld [vmem:[%s3872_s29 + $0x28] sm:$0xff]  }
  0x17   : > { %v3215_v2 = vld [vmem:[%s747_s26 + $0x8] sm:$0xff]  ;;  %v3217_v3 = vld [vmem:[%s747_s26] sm:$0xff]  ;;  %v3219_v4 = vld [vmem:[%s747_s26 + $0x18] sm:$0xff]  ;;  %2775 = vmatprep.subr.bf16.mxu0 %v2971_v10  ;;  %s3742_s5 = scalar_lea.vmem %s3850_s18, %s2687_s28  ;;  %s2600_s0 = sshll.u32 %s3880_s30, 3 }
  0x18   : > { %912 = vperm.xlu0 %2962, %v3215_v2   ;;  %793 = vst.msk [vmem:[%s752_s27 + $0x8] sm:$0xff] %vm791_vm0, %v3215_v2  ;;  %855 = vperm.xlu1 %2958, %v3217_v3   ;;  %792 = vst.msk [vmem:[%s752_s27] sm:$0xff] %vm791_vm0, %v3217_v3  ;;  %v3229_v5 = vld [vmem:[%s747_s26 + $0x10] sm:$0xff]  ;;  %v3231_v6 = vld [vmem:[%s747_s26 + $0x20] sm:$0xff] }
  0x19   : > { %795 = vst.msk [vmem:[%s752_s27 + $0x18] sm:$0xff] %vm791_vm0, %v3219_v4  ;;  %v3233_v7 = vld [vmem:[%s747_s26 + $0x28] sm:$0xff]  ;;  %794 = vst.msk [vmem:[%s752_s27 + $0x10] sm:$0xff] %vm791_vm0, %v3229_v5  ;;  %v3241_v8 = vld [vmem:[%s747_s26 + $0x30] sm:$0xff]  ;;  %2776 = vmatpush3.bf16.msra.mxu0 %v2971_v10 }
  0x1a   : > { %796 = vst.msk [vmem:[%s752_s27 + $0x20] sm:$0xff] %vm791_vm0, %v3231_v6  ;;  %797 = vst.msk [vmem:[%s752_s27 + $0x28] sm:$0xff] %vm791_vm0, %v3233_v7  ;;  %v3243_v9 = vld [vmem:[%s747_s26 + $0x38] sm:$0xff]  ;;  %2777 = vmatprep.subr.bf16.mxu0 %v2972_v11  ;;  %v2974_v14 = vld [vmem:[%s3872_s29 + $0x20] sm:$0xff]   ;;  %s3873_s26 = sld [smem:[#allocation7_spill]] }
  0x1b   : > { %798 = vst.msk [vmem:[%s752_s27 + $0x30] sm:$0xff] %vm791_vm0, %v3241_v8  ;;  %799 = vst.msk [vmem:[%s752_s27 + $0x38] sm:$0xff] %vm791_vm0, %v3243_v9  ;;  %v2975_v15 = vld [vmem:[%s3872_s29 + $0x18] sm:$0xff]   ;;  %v2976_v16 = vld [vmem:[%s3872_s29 + $0x10] sm:$0xff]   ;;  %s3878_s27 = sld [smem:[#allocation8_spill]] }
  0x1c   : > { %2963 = vset.pattern.permute.xlu0 %v3069_v12  ;;  %859 = vperm.xlu1 %2958, %v3215_v2   ;;  %v2977_v17 = vld [vmem:[%s3872_s29 + $0x8] sm:$0xff]   ;;  %v2978_v18 = vld [vmem:[%s3872_s29] sm:$0xff]  }
  0x1d   : > { %803 = vperm.xlu0 %2963, %v3217_v3   ;;  %2778 = vmatpush3.bf16.msra.mxu0 %v2972_v11  ;;  %v3324_v28 = vld [vmem:[%s3874_s2] ss:$0 sm:$0xff]  ;;  %v3330_v32 = vld [vmem:[%s3874_s2 + $0x1] ss:$0 sm:$0xff]  ;;  %v3335_v33 = vld [vmem:[%s3874_s2 + $0x2] ss:$0 sm:$0xff] }
  0x1e   : > { %2779 = vmatprep.subr.bf16.mxu0 %v2973_v13  ;;  %v3344_v44 = vld [vmem:[%s3875_s25] ss:$0 sm:$0xff]  ;;  %s3876_s25 = sld [smem:[#allocation9_spill]]  ;;  %s2690_s2 = sshll.u32 %s3880_s30, 4 }
  0x1f   : > { %s772_s3 = scalar_lea.vmem %s3853_s21, %s2690_s2 }
  0x20   : > { %2959 = vset.pattern.permute.xlu1 %v3069_v12  ;;  %v2979_v19 = vld [vmem:[%s3873_s26 + $0x38] sm:$0xff]   ;;  %v2980_v20 = vld [vmem:[%s3873_s26 + $0x30] sm:$0xff]   ;;  %v2981_v21 = vld [vmem:[%s3873_s26 + $0x28] sm:$0xff]  }
  0x21   : > { %808 = vperm.xlu0 %2963, %v3215_v2   ;;  %818 = vperm.xlu1 %2959, %v3219_v4   ;;  %v2982_v22 = vld [vmem:[%s3873_s26 + $0x20] sm:$0xff]   ;;  %v2983_v23 = vld [vmem:[%s3873_s26 + $0x18] sm:$0xff]  }
  0x22   : > { %2780 = vmatpush3.bf16.msra.mxu0 %v2973_v13  ;;  %2799 = vmatprep.subr.bf16.mxu1 %v2979_v19 }
  0x23   : > { %2781 = vmatprep.subr.bf16.mxu0 %v2974_v14  ;;  %2800 = vmatpush3.bf16.msra.mxu1 %v2979_v19 }
  0x24   : > { %2801 = vmatprep.subr.bf16.mxu1 %v2980_v20 }
  0x25   : > { %813 = vperm.xlu0 %2963, %v3229_v5   ;;  %2960 = vset.pattern.permute.xlu1 %v3068_v1 }
  0x26   : > { %867 = vperm.xlu1 %2960, %v3219_v4   ;;  %2782 = vmatpush3.bf16.msra.mxu0 %v2974_v14 }
  0x27   : > { %2783 = vmatprep.subr.bf16.mxu0 %v2975_v15  ;;  %2802 = vmatpush3.bf16.msra.mxu1 %v2980_v20 }
  0x28   : > { %2803 = vmatprep.subr.bf16.mxu1 %v2981_v21 }
  0x29   : > { %823 = vperm.xlu0 %2963, %v3231_v6  }
  0x2a   : > { %2961 = vset.pattern.permute.xlu1 %v3067_v0  ;;  %2784 = vmatpush3.bf16.msra.mxu0 %v2975_v15 }
  0x2b   : > { %908 = vperm.xlu1 %2961, %v3217_v3   ;;  %2785 = vmatprep.subr.bf16.mxu0 %v2976_v16 }
  0x2c   : > { %2804 = vmatpush3.bf16.msra.mxu1 %v2981_v21 }
  0x2d   : > { %2964 = vset.pattern.permute.xlu0 %v3068_v1  ;;  %2805 = vmatprep.subr.bf16.mxu1 %v2982_v22 }
  0x2e   : > { %863 = vperm.xlu0 %2964, %v3229_v5   ;;  %2786 = vmatpush3.bf16.msra.mxu0 %v2976_v16 }
  0x2f   : > { %916 = vperm.xlu1 %2961, %v3229_v5   ;;  %2787 = vmatprep.subr.bf16.mxu0 %v2977_v17 }
  0x30   : > { %2806 = vmatpush3.bf16.msra.mxu1 %v2982_v22 }
  0x31   : > { %2807 = vmatprep.subr.bf16.mxu1 %v2983_v23 }
  0x32   : > { %875 = vperm.xlu0 %2964, %v3233_v7   ;;  %2788 = vmatpush3.bf16.msra.mxu0 %v2977_v17 }
  0x33   : > { %920 = vperm.xlu1 %2961, %v3219_v4   ;;  %2789 = vmatprep.subr.bf16.mxu0 %v2978_v18 }
  0x34   : > { %2808 = vmatpush3.bf16.msra.mxu1 %v2983_v23 }
  0x36   : > { %879 = vperm.xlu0 %2964, %v3241_v8   ;;  %2790 = vmatpush3.bf16.msra.mxu0 %v2978_v18 }
  0x37   : > { %2965 = vset.pattern.permute.xlu1 %v3069_v12 }
  0x38   : > { %828 = vperm.xlu1 %2965, %v3233_v7  }
  0x3a   : > { %2969 = vset.pattern.permute.xlu0 %v3067_v0 }
  0x3b   : > { %924 = vperm.xlu0 %2969, %v3231_v6  }
  0x3c   : > { %2966 = vset.pattern.permute.xlu1 %v3068_v1 }
  0x3d   : > { %871 = vperm.xlu1 %2966, %v3231_v6  }
  0x3f   : > { %936 = vperm.xlu0 %2969, %v3243_v9  }
  0x41   : > { %2967 = vset.pattern.permute.xlu1 %v3069_v12 }
  0x42   : > { %833 = vperm.xlu1 %2967, %v3241_v8  }
  0x46   : > { %838 = vperm.xlu1 %2967, %v3243_v9  }
  0x4a   : > { %2968 = vset.pattern.permute.xlu1 %v3068_v1 }
  0x4b   : > { %883 = vperm.xlu1 %2968, %v3243_v9  }
  0x4f   : > { %2970 = vset.pattern.permute.xlu1 %v3067_v0 }
  0x50   : > { %928 = vperm.xlu1 %2970, %v3233_v7  }
  0x54   : > { %932 = vperm.xlu1 %2970, %v3241_v8  }
  0x93   : > { %v856_v24 = vpop.permute.xlu1 %855  ;;  %v913_v25 = vpop.permute.xlu0 %912 }
  0x94   : > { %v944_v36 = vmul.f32 %v3335_v33, %v913_v25  ;;  %v890_v41 = vmul.f32 %v3330_v32, %v856_v24 }
  0x97   : > { %v860_v26 = vpop.permute.xlu1 %859 }
  0x98   : > { %v804_v27 = vpop.permute.xlu0 %803  ;;  %v891_v34 = vmul.f32 %v3330_v32, %v860_v26 }
  0x99   : > { %v845_v39 = vmul.f32 %v3324_v28, %v804_v27 }
  0x9b   : > { %v898_v45 = vadd.f32 %v890_v41, %v845_v39 }
  0x9c   : > { %v809_v29 = vpop.permute.xlu0 %808  ;;  %v819_v30 = vpop.permute.xlu1 %818 }
  0x9d   : > { %v846_v31 = vmul.f32 %v3324_v28, %v809_v29  ;;  %v848_v57 = vmul.f32 %v3324_v28, %v819_v30 }
  0x9f   : > { %v899_v37 = vadd.f32 %v891_v34, %v846_v31 }
  0xa0   : > { %v814_v35 = vpop.permute.xlu0 %813 }
  0xa1   : > { %v868_v38 = vpop.permute.xlu1 %867  ;;  %v952_v42 = vadd.f32 %v944_v36, %v899_v37  ;;  %v847_v47 = vmul.f32 %v3324_v28, %v814_v35 }
  0xa2   : > { %v893_v53 = vmul.f32 %v3330_v32, %v868_v38 }
  0xa3   : > { %v967_v50 = vadd.f32 %v3344_v44, %v952_v42 }
  0xa4   : > { %v824_v40 = vpop.permute.xlu0 %823  ;;  %v901_v62 = vadd.f32 %v893_v53, %v848_v57 }
  0xa5   : > { %v975_v59 = vmax.f32 %v967_v50, 0.0  ;;  %v849_v24 = vmul.f32 %v3324_v28, %v824_v40 }
  0xa6   : > { %v909_v43 = vpop.permute.xlu1 %908 }
  0xa7   : > { %v943_v46 = vmul.f32 %v3335_v33, %v909_v43 }
  0xa9   : > { %v951_v48 = vadd.f32 %v943_v46, %v898_v45  ;;  %v864_v49 = vpop.permute.xlu0 %863 }
  0xaa   : > { %v892_v51 = vmul.f32 %v3330_v32, %v864_v49  ;;  %v917_v52 = vpop.permute.xlu1 %916 }
  0xab   : > { %v945_v54 = vmul.f32 %v3335_v33, %v917_v52  ;;  %v966_v55 = vadd.f32 %v3344_v44, %v951_v48 }
  0xac   : > { %v900_v56 = vadd.f32 %v892_v51, %v847_v47 }
  0xad   : > { %v974_v58 = vmax.f32 %v966_v55, 0.0  ;;  %v876_v16 = vpop.permute.xlu0 %875 }
  0xae   : > { %v953_v60 = vadd.f32 %v945_v54, %v900_v56  ;;  %v921_v61 = vpop.permute.xlu1 %920  ;;  %v895_v31 = vmul.f32 %v3330_v32, %v876_v16 }
  0xaf   : > { %v946_v63 = vmul.f32 %v3335_v33, %v921_v61  ;;  %v982_v0 = vpack.c.bf16 %v975_v59, %v974_v58  ;;  %v2984_v59 = vld [vmem:[%s3873_s26 + $0x10] sm:$0xff]  }
  0xb0   : > { %v968_v1 = vadd.f32 %v3344_v44, %v953_v60  ;;  %2809 = vmatprep.subr.bf16.mxu1 %v2984_v59  ;;  %v2987_v60 = vld [vmem:[%s3876_s25 + $0x38] sm:$0xff]   ;;  %v2988_v61 = vld [vmem:[%s3876_s25 + $0x30] sm:$0xff]  }
  0xb1   : > { %v954_v10 = vadd.f32 %v946_v63, %v901_v62  ;;  %2791 = vmatprep.mubr.bf16.mxu0 %v982_v0  ;;  %v880_v19 = vpop.permute.xlu0 %879  ;;  %2810 = vmatpush3.bf16.msra.mxu1 %v2984_v59  ;;  %v2989_v62 = vld [vmem:[%s3876_s25 + $0x28] sm:$0xff]   ;;  %v2990_v63 = vld [vmem:[%s3876_s25 + $0x20] sm:$0xff]   ;;  %v2991_v0 = vld [vmem:[%s3876_s25 + $0x18] sm:$0xff]  }
  0xb2   : > { %v976_v14 = vmax.f32 %v968_v1, 0.0  ;;  %v896_v40 = vmul.f32 %v3330_v32, %v880_v19  ;;  %2823 = vmatprep.subr.bf16.mxu0 %v2987_v60 }
  0xb3   : > { %v969_v11 = vadd.f32 %v3344_v44, %v954_v10  ;;  %v829_v13 = vpop.permute.xlu1 %828 }
  0xb4   : > { %v850_v34 = vmul.f32 %v3324_v28, %v829_v13 }
  0xb5   : > { %v977_v15 = vmax.f32 %v969_v11, 0.0  ;;  %v2607_v11 = vld [vmem:[%s3877_s6] ss:$0 sm:$0xff]  ;;  %s3504_s6 = scalar_lea.vmem %s3851_s19, %s3205_s24  ;;  %s3747_s24 = scalar_lea.vmem %s3852_s20, %s2687_s28 }
  0xb6   : > { %v925_v23 = vpop.permute.xlu0 %924  ;;  %v903_v41 = vadd.f32 %v895_v31, %v850_v34 }
  0xb7   : > { %v983_v17 = vpack.c.bf16 %v977_v15, %v976_v14  ;;  %v947_v26 = vmul.f32 %v3335_v33, %v925_v23 }
  0xb8   : > { %v872_v18 = vpop.permute.xlu1 %871 }
  0xb9   : > { %2792 = vmatmul.mubr.bf16.vlgmr.msra.gmra.mxu0 %v983_v17  ;;  %v894_v22 = vmul.f32 %v3330_v32, %v872_v18 }
  0xba   : > { %v937_v30 = vpop.permute.xlu0 %936  ;;  %2824 = vmatpush3.bf16.msra.mxu0 %v2987_v60 }
  0xbb   : > { %v902_v25 = vadd.f32 %v894_v22, %v849_v24  ;;  %v950_v38 = vmul.f32 %v3335_v33, %v937_v30  ;;  %2825 = vmatprep.subr.bf16.mxu0 %v2988_v61 }
  0xbd   : > { %v834_v20 = vpop.permute.xlu1 %833  ;;  %v955_v36 = vadd.f32 %v947_v26, %v902_v25 }
  0xbe   : > { %v851_v42 = vmul.f32 %v3324_v28, %v834_v20  ;;  %2826 = vmatpush3.bf16.msra.mxu0 %v2988_v61 }
  0xbf   : > { %v970_v45 = vadd.f32 %v3344_v44, %v955_v36  ;;  %2827 = vmatprep.subr.bf16.mxu0 %v2989_v62 }
  0xc0   : > { %v904_v49 = vadd.f32 %v896_v40, %v851_v42  ;;  %v2992_v42 = vld [vmem:[%s3876_s25 + $0x10] sm:$0xff]  }
  0xc1   : > { %v839_v21 = vpop.permute.xlu1 %838  ;;  %v978_v52 = vmax.f32 %v970_v45, 0.0  ;;  %v2994_v45 = vld [vmem:[%s3876_s25] sm:$0xff]  }
  0xc2   : > { %v852_v35 = vmul.f32 %v3324_v28, %v839_v21  ;;  %2828 = vmatpush3.bf16.msra.mxu0 %v2989_v62 }
  0xc3   : > { %2829 = vmatprep.subr.bf16.mxu0 %v2990_v63 }
  0xc6   : > { %v884_v27 = vpop.permute.xlu1 %883  ;;  %2830 = vmatpush3.bf16.msra.mxu0 %v2990_v63 }
  0xc7   : > { %v897_v29 = vmul.f32 %v3330_v32, %v884_v27  ;;  %2831 = vmatprep.subr.bf16.mxu0 %v2991_v0 }
  0xc9   : > { %v905_v37 = vadd.f32 %v897_v29, %v852_v35 }
  0xca   : > { %2832 = vmatpush3.bf16.msra.mxu0 %v2991_v0 }
  0xcb   : > { %v929_v39 = vpop.permute.xlu1 %928  ;;  %v958_v46 = vadd.f32 %v950_v38, %v905_v37  ;;  %2833 = vmatprep.subr.bf16.mxu0 %v2992_v42 }
  0xcc   : > { %v948_v43 = vmul.f32 %v3335_v33, %v929_v39 }
  0xcd   : > { %v973_v53 = vadd.f32 %v3344_v44, %v958_v46  ;;  %v2995_v46 = vld [vmem:[%s3841_s9 + $0x70] ss:$8 sps:$4 sm:$0xff]  }
  0xce   : > { %v956_v47 = vadd.f32 %v948_v43, %v903_v41  ;;  %2834 = vmatpush3.bf16.msra.mxu0 %v2992_v42  ;;  %v2993_v43 = vld [vmem:[%s3876_s25 + $0x8] sm:$0xff]  }
  0xcf   : > { %v933_v48 = vpop.permute.xlu1 %932  ;;  %v981_v56 = vmax.f32 %v973_v53, 0.0  ;;  %2835 = vmatprep.subr.bf16.mxu0 %v2993_v43  ;;  %v3004_v53 = vld [vmem:[%s3841_s9 + $0x40] ss:$8 sps:$4 sm:$0xff]  }
  0xd0   : > { %v971_v50 = vadd.f32 %v3344_v44, %v956_v47  ;;  %v949_v51 = vmul.f32 %v3335_v33, %v933_v48  ;;  %v2985_v33 = vld [vmem:[%s3873_s26 + $0x8] sm:$0xff]   ;;  %v2997_v47 = vld [vmem:[%s3841_s9 + $0x74] ss:$8 sps:$4 sm:$0xff]  }
  0xd1   : > { %2811 = vmatprep.subr.bf16.mxu1 %v2985_v33  ;;  %v3000_v48 = vld [vmem:[%s3841_s9 + $0x64] ss:$8 sps:$4 sm:$0xff]   ;;  %v3016_v42 = vld [vmem:[%s3841_s9] ss:$8 sps:$4 sm:$0xff]  }
  0xd2   : > { %v979_v54 = vmax.f32 %v971_v50, 0.0  ;;  %v957_v55 = vadd.f32 %v949_v51, %v904_v49  ;;  %2812 = vmatpush3.bf16.msra.mxu1 %v2985_v33  ;;  %2836 = vmatpush3.bf16.msra.mxu0 %v2993_v43  ;;  %v2998_v49 = vld [vmem:[%s3841_s9 + $0x60] ss:$8 sps:$4 sm:$0xff]   ;;  %v3003_v50 = vld [vmem:[%s3841_s9 + $0x54] ss:$8 sps:$4 sm:$0xff]  }
  0xd3   : > { %2837 = vmatprep.subr.bf16.mxu0 %v2994_v45  ;;  %v3001_v51 = vld [vmem:[%s3841_s9 + $0x50] ss:$8 sps:$4 sm:$0xff]  }
  0xd4   : > { %v972_v32 = vadd.f32 %v3344_v44, %v957_v55  ;;  %v984_v28 = vpack.c.bf16 %v979_v54, %v978_v52  ;;  %v2986_v44 = vld [vmem:[%s3873_s26] sm:$0xff]   ;;  %v3009_v54 = vld [vmem:[%s3841_s9 + $0x34] ss:$8 sps:$4 sm:$0xff]   ;;  %v3007_v55 = vld [vmem:[%s3841_s9 + $0x30] ss:$8 sps:$4 sm:$0xff]  }
  0xd5   : > { %2813 = vmatprep.subr.bf16.mxu1 %v2986_v44  ;;  %v3006_v52 = vld [vmem:[%s3841_s9 + $0x44] ss:$8 sps:$4 sm:$0xff]  }
  0xd6   : > { %v980_v57 = vmax.f32 %v972_v32, 0.0  ;;  %2795 = vmatprep.mubr.bf16.mxu0 %v984_v28  ;;  %2814 = vmatpush3.bf16.msra.mxu1 %v2986_v44 }
  0xd7   : > { %2838 = vmatpush3.bf16.msra.mxu0 %v2994_v45  ;;  %1587 = vmatprep.subr.bf16.mxu1 %v2997_v47 }
  0xd8   : > { %v985_v58 = vpack.c.bf16 %v981_v56, %v980_v57  ;;  %v2616_v56 = vld [vmem:[%s3878_s27] ss:$0 sm:$0xff] }
  0xda   : > { %2796 = vmatmul.mubr.bf16.gmra.mxu0 %v985_v58 }
 0x179   : > { %v2793_v1 = vpop.f32.mrf.mxu0 }
 0x17a   : > { %v1100_v16 = vadd.f32 %v2793_v1, %v2607_v11 }
 0x17b   : > { %v1091_v10 = vpop.f32.mrf.mxu0 }
 0x17c   : > { %v1092_v14 = vadd.f32 %v2607_v11, %v1091_v10  ;;  %v3406_v22 = vmax.f32 %v1100_v16, 0.0 }
 0x17d   : > { %v2794_v13 = vpop.f32.mrf.mxu0 }
 0x17e   : > { %v1103_v15 = vadd.f32 %v2794_v13, %v2607_v11  ;;  %v3402_v20 = vmax.f32 %v1092_v14, 0.0 }
 0x17f   : > { %v1094_v17 = vpop.f32.mrf.mxu0 }
 0x180   : > { %v1095_v18 = vadd.f32 %v2607_v11, %v1094_v17  ;;  %v3400_v19 = vmax.f32 %v1103_v15, 0.0 }
 0x182   : > { %v3404_v21 = vmax.f32 %v1095_v18, 0.0  ;;  %v1180_v24 = vpack.c.bf16 %v3400_v19, %v3406_v22 }
 0x184   : > { %v1179_v23 = vpack.c.bf16 %v3404_v21, %v3402_v20 }
 0x186   : > { %2815 = vmatprep.mubr.bf16.mxu1 %v1179_v23 }
 0x187   : > { %2816 = vmatmul.mubr.bf16.vlgmr.msra.gmra.mxu1 %v1180_v24 }
 0x188   : > { %1588 = vmatpush1.bf16.msra.mxu1 %v2995_v46  ;;  %v2625_v46 = vld [vmem:[%s3840_s8] ss:$0 sm:$0xff] }
 0x189   : > { %1589 = vmatprep.subr.bf16.mxu1 %v3000_v48 }
 0x18c   : > { %1590 = vmatpush1.bf16.msra.mxu1 %v2998_v49 }
 0x18d   : > { %1591 = vmatprep.subr.bf16.mxu1 %v3003_v50 }
 0x190   : > { %1592 = vmatpush1.bf16.msra.mxu1 %v3001_v51 }
 0x191   : > { %1593 = vmatprep.subr.bf16.mxu1 %v3006_v52 }
 0x194   : > { %1594 = vmatpush1.bf16.msra.mxu1 %v3004_v53 }
 0x195   : > { %1595 = vmatprep.subr.bf16.mxu1 %v3009_v54 }
 0x198   : > { %1596 = vmatpush1.bf16.msra.mxu1 %v3007_v55 }
 0x19a   : > { %v2797_v25 = vpop.f32.mrf.mxu0 }
 0x19b   : > { %v1116_v31 = vadd.f32 %v2797_v25, %v2607_v11 }
 0x19c   : > { %v1107_v26 = vpop.f32.mrf.mxu0 }
 0x19d   : > { %v1108_v29 = vadd.f32 %v2607_v11, %v1107_v26  ;;  %v3418_v39 = vmax.f32 %v1116_v31, 0.0  ;;  %v3012_v31 = vld [vmem:[%s3841_s9 + $0x24] ss:$8 sps:$4 sm:$0xff]  }
 0x19e   : > { %v2798_v27 = vpop.f32.mrf.mxu0  ;;  %1597 = vmatprep.subr.bf16.mxu1 %v3012_v31 }
 0x19f   : > { %v1119_v30 = vadd.f32 %v2798_v27, %v2607_v11  ;;  %v3414_v37 = vmax.f32 %v1108_v29, 0.0 }
 0x1a0   : > { %v1110_v34 = vpop.f32.mrf.mxu0 }
 0x1a1   : > { %v1111_v35 = vadd.f32 %v2607_v11, %v1110_v34  ;;  %v3412_v36 = vmax.f32 %v1119_v30, 0.0  ;;  %v3010_v34 = vld [vmem:[%s3841_s9 + $0x20] ss:$8 sps:$4 sm:$0xff]  }
 0x1a2   : > { %1598 = vmatpush1.bf16.msra.mxu1 %v3010_v34 }
 0x1a3   : > { %v3416_v38 = vmax.f32 %v1111_v35, 0.0  ;;  %v1182_v40 = vpack.c.bf16 %v3412_v36, %v3418_v39  ;;  %v3015_v35 = vld [vmem:[%s3841_s9 + $0x14] ss:$8 sps:$4 sm:$0xff]  }
 0x1a4   : > { %1599 = vmatprep.subr.bf16.mxu1 %v3015_v35 }
 0x1a5   : > { %v1181_v41 = vpack.c.bf16 %v3416_v38, %v3414_v37 }
 0x1a7   : > { %2819 = vmatprep.mubr.bf16.mxu1 %v1181_v41  ;;  %v3013_v41 = vld [vmem:[%s3841_s9 + $0x10] ss:$8 sps:$4 sm:$0xff]  }
 0x1a8   : > { %2820 = vmatmul.mubr.bf16.gmra.mxu1 %v1182_v40  ;;  %v3018_v40 = vld [vmem:[%s3841_s9 + $0x4] ss:$8 sps:$4 sm:$0xff]  }
 0x1a9   : > { %1619 = vmatprep.mubr.bf16.mxu1 %v3069_v12  ;;  %1600 = vmatpush1.bf16.msra.mxu1 %v3013_v41 }
 0x1aa   : > { %1601 = vmatprep.subr.bf16.mxu1 %v3018_v40 }
 0x1ad   : > { %1602 = vmatpush1.bf16.msra.mxu1 %v3016_v42 }
 0x247   : > { %v2817_v32 = vpop.f32.mrf.mxu1 }
 0x248   : > { %v1297_v33 = vadd.f32 %v2817_v32, %v2616_v56 }
 0x249   : > { %v1288_v28 = vpop.f32.mrf.mxu1 }
 0x24a   : > { %v1289_v58 = vadd.f32 %v2616_v56, %v1288_v28  ;;  %v1321_v0 = vmax.f32 %v1297_v33, 0.0 }
 0x24b   : > { %v2818_v57 = vpop.f32.mrf.mxu1 }
 0x24c   : > { %v1300_v59 = vadd.f32 %v2818_v57, %v2616_v56  ;;  %v1319_v62 = vmax.f32 %v1289_v58, 0.0 }
 0x24d   : > { %v1291_v44 = vpop.f32.mrf.mxu1 }
 0x24e   : > { %v1292_v60 = vadd.f32 %v2616_v56, %v1291_v44  ;;  %v1322_v61 = vmax.f32 %v1300_v59, 0.0 }
 0x250   : > { %v1320_v63 = vmax.f32 %v1292_v60, 0.0  ;;  %v1328_v10 = vpack.c.bf16 %v1322_v61, %v1321_v0 }
 0x252   : > { %v1327_v1 = vpack.c.bf16 %v1320_v63, %v1319_v62 }
 0x254   : > { %2839 = vmatprep.mubr.bf16.mxu0 %v1327_v1 }
 0x255   : > { %2840 = vmatmul.mubr.bf16.vlgmr.msra.gmra.mxu0 %v1328_v10 }
 0x268   : > { %v2821_v11 = vpop.f32.mrf.mxu1 }
 0x269   : > { %v1313_v17 = vadd.f32 %v2821_v11, %v2616_v56 }
 0x26a   : > { %v1304_v13 = vpop.f32.mrf.mxu1 }
 0x26b   : > { %v1305_v15 = vadd.f32 %v2616_v56, %v1304_v13  ;;  %v1325_v27 = vmax.f32 %v1313_v17, 0.0  ;;  %v1495_v17 = vld [vmem:[%s3842_s10] sm:$0x3] }
 0x26c   : > { %v2822_v14 = vpop.f32.mrf.mxu1 }
 0x26d   : > { %v1316_v16 = vadd.f32 %v2822_v14, %v2616_v56  ;;  %v1323_v25 = vmax.f32 %v1305_v15, 0.0  ;;  %v1497_v14 = vlaneseq }
 0x26e   : > { %v1307_v18 = vpop.f32.mrf.mxu1 }
 0x26f   : > { %v1308_v23 = vadd.f32 %v2616_v56, %v1307_v18  ;;  %v1326_v24 = vmax.f32 %v1316_v16, 0.0  ;;  %v3492_v15 = vshrl.u32 %v1497_v14, 7 }
 0x271   : > { %v1324_v26 = vmax.f32 %v1308_v23, 0.0  ;;  %v1330_v30 = vpack.c.bf16 %v1326_v24, %v1325_v27  ;;  %v1503_v16 = vsub.s32 1, %v3492_v15 }
 0x273   : > { %v1329_v29 = vpack.c.bf16 %v1324_v26, %v1323_v25  ;;  %v1504_v18 = vrot.slane %v1495_v17, %v1503_v16 }
 0x275   : > { %2843 = vmatprep.mubr.bf16.mxu0 %v1329_v29 }
 0x276   : > { %2844 = vmatmul.mubr.bf16.gmra.mxu0 %v1330_v30 }
 0x315   : > { %v2841_v43 = vpop.f32.mrf.mxu0 }
 0x316   : > { %v1445_v55 = vadd.f32 %v2841_v43, %v2625_v46 }
 0x317   : > { %v1436_v45 = vpop.f32.mrf.mxu0 }
 0x318   : > { %v1437_v48 = vadd.f32 %v2625_v46, %v1436_v45  ;;  %v1469_v28 = vmax.f32 %v1445_v55, 0.0 }
 0x319   : > { %v2842_v47 = vpop.f32.mrf.mxu0 }
 0x31a   : > { %v1467_v51 = vmax.f32 %v1437_v48, 0.0  ;;  %v1448_v53 = vadd.f32 %v2842_v47, %v2625_v46 }
 0x31b   : > { %v1439_v49 = vpop.f32.mrf.mxu0 }
 0x31c   : > { %v1440_v50 = vadd.f32 %v2625_v46, %v1439_v49  ;;  %v1470_v32 = vmax.f32 %v1448_v53, 0.0 }
 0x31e   : > { %v1468_v52 = vmax.f32 %v1440_v50, 0.0  ;;  %v1476_v56 = vpack.c.bf16 %v1470_v32, %v1469_v28 }
 0x320   : > { %v1475_v54 = vpack.c.bf16 %v1468_v52, %v1467_v51 }
 0x322   : > { %1620 = vmatmul.mubr.bf16.vlgmr.msra.gmra.mxu1 %v1475_v54 }
 0x323   : > { %1629 = vmatprep.mubr.bf16.mxu1 %v3069_v12 }
 0x32a   : > { %1630 = vmatmul.mubr.bf16.gmra.mxu1 %v1476_v56 }
 0x32b   : > { %1639 = vmatprep.mubr.bf16.mxu1 %v3069_v12 }
 0x336   : > { %v2845_v57 = vpop.f32.mrf.mxu0 }
 0x337   : > { %v1461_v1 = vadd.f32 %v2845_v57, %v2625_v46 }
 0x338   : > { %v1452_v58 = vpop.f32.mrf.mxu0 }
 0x339   : > { %v1453_v33 = vadd.f32 %v2625_v46, %v1452_v58  ;;  %v1473_v11 = vmax.f32 %v1461_v1, 0.0 }
 0x33a   : > { %v2846_v59 = vpop.f32.mrf.mxu0 }
 0x33b   : > { %v1471_v61 = vmax.f32 %v1453_v33, 0.0  ;;  %v1464_v63 = vadd.f32 %v2846_v59, %v2625_v46 }
 0x33c   : > { %v1455_v44 = vpop.f32.mrf.mxu0 }
 0x33d   : > { %v1456_v60 = vadd.f32 %v2625_v46, %v1455_v44  ;;  %v1474_v10 = vmax.f32 %v1464_v63, 0.0  ;;  %v1499_v46 = vsub.s32 0, %v3492_v15 }
 0x33f   : > { %v1472_v62 = vmax.f32 %v1456_v60, 0.0  ;;  %v1478_v13 = vpack.c.bf16 %v1474_v10, %v1473_v11  ;;  %v1500_v50 = vrot.slane %v1495_v17, %v1499_v46 }
 0x341   : > { %v1477_v0 = vpack.c.bf16 %v1472_v62, %v1471_v61 }
 0x343   : > { %1640 = vmatmul.mubr.bf16.gmra.mxu1 %v1477_v0 }
 0x344   : > { %1649 = vmatprep.mubr.bf16.mxu1 %v3069_v12 }
 0x34b   : > { %1650 = vmatmul.mubr.bf16.gmra.mxu1 %v1478_v13 }
 0x3e2   : > { %v3498_v23 = vpop.f32.mrf.mxu1 }
 0x3e3   : > { %v1622_v13 = vadd.f32 %v3498_v23, %v1500_v50 }
 0x3e4   : > { %v1623_v24 = vpop.f32.mrf.mxu1 }
 0x3e5   : > { %v1624_v25 = vadd.f32 %v1623_v24, %v1504_v18  ;;  %v3573_v23 = vadd.f32 %v1622_v13, %v3402_v20 }
 0x3e6   : > { %v1625_v12 = vpop.f32.mrf.mxu1 }
 0x3e7   : > { %v3507_v26 = vadd.f32 %v1624_v25, %v3217_v3  ;;  %v1626_v1 = vadd.f32 %v1625_v12, %v1500_v50  ;;  %v1684_v12 = vmul.f32 %v3573_v23, %v3573_v23 }
 0x3e8   : > { %v1627_v27 = vpop.f32.mrf.mxu1 }
 0x3e9   : > { %1668 = vst.msk [vmem:[%s3504_s6] sm:$0xff] %vm791_vm0, %v3507_v26  ;;  %v1628_v29 = vadd.f32 %v1627_v27, %v1504_v18  ;;  %v3568_v17 = vadd.f32 %v1626_v1, %v3404_v21  ;;  %v1782_v27 = vadd.s32 8, %v3492_v15  ;;  %v3030_v1 = vld [vmem:[%s3845_s13 + $0x20] sm:$0xff]  }
 0x3ea   : > { %v1631_v30 = vpop.f32.mrf.mxu1 }
 0x3eb   : > { %v3513_v31 = vadd.f32 %v1628_v29, %v3215_v2  ;;  %v1632_v62 = vadd.f32 %v1631_v30, %v1500_v50  ;;  %v1685_v25 = vmul.f32 %v3568_v17, %v3568_v17  ;;  %v1784_v29 = vand.u32 127, %v1497_v14  ;;  %v3019_v14 = vld [vmem:[%s3843_s11 + $0x38] sm:$0xff]  }
 0x3ec   : > { %v1633_v34 = vpop.f32.mrf.mxu1  ;;  %v1785_v30 = vmul.u32 4, %v3492_v15  ;;  %v3020_v15 = vld [vmem:[%s3843_s11 + $0x30] sm:$0xff]  }
 0x3ed   : > { %1669 = vst.msk [vmem:[%s3504_s6 + $0x8] sm:$0xff] %vm791_vm0, %v3513_v31  ;;  %v1634_v35 = vadd.f32 %v1633_v34, %v1504_v18  ;;  %v1786_v34 = vmul.u32 4, %v1782_v27  ;;  %v3039_v27 = vld [vmem:[%s3847_s15 + $0x18] sm:$0xff]  }
 0x3ee   : > { %v1635_v41 = vpop.f32.mrf.mxu1  ;;  %vm1787_vm2 = vcmp.eq.s32.totalorder %v1784_v29, %v1785_v30 }
 0x3ef   : > { %v3519_v40 = vadd.f32 %v1634_v35, %v3229_v5  ;;  %v1636_v33 = vadd.f32 %v1635_v41, %v1500_v50  ;;  %v3070_v35 = vmov 0.0   ;;  %vm1788_vm3 = vcmp.eq.s32.totalorder %v1784_v29, %v1786_v34  ;;  %v2656_v29 = vld [vmem:[%s3844_s12] ss:$0 sm:$0xff] }
 0x3f0   : > { %v1637_v3 = vpop.f32.mrf.mxu1  ;;  %2885 = vmatprep.subr.bf16.mxu1 %v3070_v35  ;;  %v2650_v41 = vsel %vm1787_vm2, 1.0, %v3070_v35  ;;  %2901 = vmatprep.mubr.msk.bf16.mxu1 %vm3071_vm4, %v3070_v35 }
 0x3f1   : > { %1670 = vst.msk [vmem:[%s3504_s6 + $0x10] sm:$0xff] %vm791_vm0, %v3519_v40  ;;  %v1638_v42 = vadd.f32 %v1637_v3, %v1504_v18  ;;  %v3555_v10 = vadd.f32 %v1636_v33, %v3400_v19  ;;  %2863 = vmatprep.mubr.msk.f32.mxu0 %vm1162_vm1, %v2650_v41  ;;  %2886 = vmatpush3.bf16.msra.mxu1 %v3019_v14 }
 0x3f2   : > { %2887 = vmatprep.subr.bf16.mxu1 %v3070_v35 }
 0x3f3   : > { %v1663_v43 = vadd.f32 %v1638_v42, %v3219_v4 }
 0x3f5   : > { %1671 = vst.msk [vmem:[%s3504_s6 + $0x18] sm:$0xff] %vm791_vm0, %v1663_v43  ;;  %2888 = vmatpush3.bf16.msra.mxu1 %v3020_v15 }
 0x3f6   : > { %2889 = vmatprep.subr.bf16.mxu1 %v3070_v35 }
 0x403   : > { %v1641_v2 = vpop.f32.mrf.mxu1 }
 0x405   : > { %v1643_v45 = vpop.f32.mrf.mxu1 }
 0x406   : > { %v1644_v47 = vadd.f32 %v1643_v45, %v1504_v18 }
 0x407   : > { %v1645_v48 = vpop.f32.mrf.mxu1 }
 0x408   : > { %v1664_v49 = vadd.f32 %v1644_v47, %v3231_v6  ;;  %v1646_v54 = vadd.f32 %v1645_v48, %v1500_v50  ;;  %v1642_v6 = vadd.f32 %v1641_v2, %v1500_v50 }
 0x409   : > { %v1647_v5 = vpop.f32.mrf.mxu1 }
 0x40a   : > { %1672 = vst.msk [vmem:[%s3504_s6 + $0x20] sm:$0xff] %vm791_vm0, %v1664_v49  ;;  %v1648_v51 = vadd.f32 %v1647_v5, %v1504_v18 }
 0x40b   : > { %v1651_v52 = vpop.f32.mrf.mxu1 }
 0x40c   : > { %v1665_v4 = vadd.f32 %v1648_v51, %v3233_v7  ;;  %v1652_v53 = vadd.f32 %v1651_v52, %v1500_v50  ;;  %v3541_v7 = vadd.f32 %v1646_v54, %v3416_v38 }
 0x40d   : > { %v1653_v55 = vpop.f32.mrf.mxu1 }
 0x40e   : > { %1673 = vst.msk [vmem:[%s3504_s6 + $0x28] sm:$0xff] %vm791_vm0, %v1665_v4  ;;  %v3535_v32 = vadd.f32 %v1652_v53, %v3418_v39  ;;  %v1654_v28 = vadd.f32 %v1653_v55, %v1504_v18  ;;  %v1689_v11 = vmul.f32 %v3541_v7, %v3541_v7 }
 0x40f   : > { %v1655_v56 = vpop.f32.mrf.mxu1 }
 0x410   : > { %v1666_v57 = vadd.f32 %v1654_v28, %v3241_v8  ;;  %v1656_v58 = vadd.f32 %v1655_v56, %v1500_v50  ;;  %v1690_v59 = vmul.f32 %v3535_v32, %v3535_v32  ;;  %v3549_v8 = vadd.f32 %v1642_v6, %v3414_v37 }
 0x411   : > { %v1657_v44 = vpop.f32.mrf.mxu1 }
 0x412   : > { %1674 = vst.msk [vmem:[%s3504_s6 + $0x30] sm:$0xff] %vm791_vm0, %v1666_v57  ;;  %v3546_v60 = vadd.f32 %v1656_v58, %v3412_v36  ;;  %v1658_v61 = vadd.f32 %v1657_v44, %v1504_v18  ;;  %1704 = vadd.xlane.f32.xlu0 %v1690_v59  ;;  %v1688_v16 = vmul.f32 %v3549_v8, %v3549_v8 }
 0x413   : > { %v1687_v18 = vmul.f32 %v3555_v10, %v3555_v10 }
 0x414   : > { %v1667_v63 = vadd.f32 %v1658_v61, %v3243_v9  ;;  %v1691_v0 = vmul.f32 %v3546_v60, %v3546_v60  ;;  %v3563_v9 = vadd.f32 %v1632_v62, %v3406_v22  ;;  %v3026_v62 = vld [vmem:[%s3843_s11] sm:$0xff]  }
 0x416   : > { %1675 = vst.msk [vmem:[%s3504_s6 + $0x38] sm:$0xff] %vm791_vm0, %v1667_v63  ;;  %2847 = vmatprep.subr.mxu0 %v1667_v63  ;;  %1706 = vadd.xlane.f32.xlu1 %v1691_v0  ;;  %v1686_v24 = vmul.f32 %v3563_v9, %v3563_v9  ;;  %v3029_v0 = vld [vmem:[%s3845_s13 + $0x28] sm:$0xff]   ;;  %s776_s6 = scalar_lea.vmem %s3854_s22, %s2600_s0 }
 0x417   : > { %1702 = vadd.xlane.f32.xlu0 %v1689_v11  ;;  %2848 = vmatpush3.msra.mxu0 %v1667_v63  ;;  %v3028_v63 = vld [vmem:[%s3845_s13 + $0x30] sm:$0xff]  }
 0x418   : > { %2849 = vmatprep.subr.mxu0 %v1666_v57 }
 0x419   : > { %2850 = vmatpush3.msra.mxu0 %v1666_v57 }
 0x41a   : > { %2851 = vmatprep.subr.mxu0 %v1665_v4  ;;  %1700 = vadd.xlane.f32.xlu1 %v1688_v16  ;;  %v3032_v16 = vld [vmem:[%s3845_s13 + $0x10] sm:$0xff]  }
 0x41b   : > { %1698 = vadd.xlane.f32.xlu0 %v1687_v18  ;;  %2852 = vmatpush3.msra.mxu0 %v1665_v4  ;;  %v3034_v18 = vld [vmem:[%s3845_s13] sm:$0xff]  }
 0x41c   : > { %2853 = vmatprep.subr.mxu0 %v1664_v49 }
 0x41d   : > { %2854 = vmatpush3.msra.mxu0 %v1664_v49 }
 0x41e   : > { %2855 = vmatprep.subr.mxu0 %v1663_v43  ;;  %1696 = vadd.xlane.f32.xlu1 %v1686_v24  ;;  %v3036_v24 = vld [vmem:[%s3847_s15 + $0x30] sm:$0xff]  }
 0x41f   : > { %1694 = vadd.xlane.f32.xlu0 %v1685_v25  ;;  %2856 = vmatpush3.msra.mxu0 %v1663_v43  ;;  %v3037_v25 = vld [vmem:[%s3847_s15 + $0x28] sm:$0xff]  }
 0x420   : > { %2857 = vmatprep.subr.mxu0 %v3519_v40 }
 0x421   : > { %2858 = vmatpush3.msra.mxu0 %v3519_v40 }
 0x422   : > { %2859 = vmatprep.subr.mxu0 %v3513_v31  ;;  %1692 = vadd.xlane.f32.xlu1 %v1684_v12  ;;  %v3038_v12 = vld [vmem:[%s3847_s15 + $0x20] sm:$0xff]  }
 0x423   : > { %2860 = vmatpush3.msra.mxu0 %v3513_v31  ;;  %v3594_v31 = vsel %vm1788_vm3, 1.0, %v3070_v35 }
 0x424   : > { %2861 = vmatprep.subr.mxu0 %v3507_v26 }
 0x425   : > { %2862 = vmatpush3.msra.mxu0 %v3507_v26 }
 0x426   : > { %2864 = vmatmul.mubr.msk.f32.vlgmr.msra.gmra.mxu0 %vm1162_vm1, %v3594_v31 }
 0x427   : > { %2882 = vmatprep.mubr.msk.f32.mxu0 %vm1162_vm1, %v2650_v41 }
 0x44c   : > { %1130 = vxpose.xlu0.b32.start [1/8] (short) %v3402_v20, 128  ;;  %v3022_v20 = vld [vmem:[%s3843_s11 + $0x20] sm:$0xff]  }
 0x450   : > { %1131 = vxpose.xlu0.b32.cont [2/8] (short) %v3404_v21, 128  ;;  %v3023_v21 = vld [vmem:[%s3843_s11 + $0x18] sm:$0xff]  }
 0x454   : > { %1132 = vxpose.xlu0.b32.cont [3/8] (short) %v3406_v22, 128  ;;  %v3024_v22 = vld [vmem:[%s3843_s11 + $0x10] sm:$0xff]  }
 0x458   : > { %1133 = vxpose.xlu0.b32.cont [4/8] (short) %v3400_v19, 128  ;;  %v3021_v19 = vld [vmem:[%s3843_s11 + $0x28] sm:$0xff]  }
 0x459   : > { %2890 = vmatpush3.bf16.msra.mxu1 %v3021_v19 }
 0x45a   : > { %2891 = vmatprep.subr.bf16.mxu1 %v3070_v35 }
 0x45c   : > { %1134 = vxpose.xlu0.b32.cont [5/8] (short) %v3414_v37, 128 }
 0x45d   : > { %2892 = vmatpush3.bf16.msra.mxu1 %v3022_v20 }
 0x45e   : > { %2893 = vmatprep.subr.bf16.mxu1 %v3070_v35 }
 0x460   : > { %1135 = vxpose.xlu0.b32.cont [6/8] (short) %v3416_v38, 128 }
 0x461   : > { %2894 = vmatpush3.bf16.msra.mxu1 %v3023_v21 }
 0x462   : > { %2895 = vmatprep.subr.bf16.mxu1 %v3070_v35 }
 0x464   : > { %1136 = vxpose.xlu0.b32.cont [7/8] (short) %v3418_v39, 128 }
 0x465   : > { %2896 = vmatpush3.bf16.msra.mxu1 %v3024_v22  ;;  %v3040_v22 = vld [vmem:[%s3847_s15 + $0x10] sm:$0xff]  }
 0x466   : > { %2897 = vmatprep.subr.bf16.mxu1 %v3070_v35 }
 0x468   : > { %1137 = vxpose.xlu0.b32.end [8/8] (short) %v3412_v36, 128  ;;  %v3025_v36 = vld [vmem:[%s3843_s11 + $0x8] sm:$0xff]  }
 0x469   : > { %2898 = vmatpush3.bf16.msra.mxu1 %v3025_v36  ;;  %v3041_v36 = vld [vmem:[%s3847_s15 + $0x8] sm:$0xff]  }
 0x46a   : > { %2899 = vmatprep.subr.bf16.mxu1 %v3070_v35 }
 0x46d   : > { %2900 = vmatpush3.bf16.msra.mxu1 %v3026_v62 }
 0x46e   : > { %2925 = vmatprep.subr.bf16.mxu1 %v3070_v35 }
 0x49b   : > { %v1705_v37 = vpop.xlane.xlu0 %1704 }
 0x49c   : > { %v1714_v38 = vadd.f32 1e-12, %v1705_v37  ;;  %v3042_v37 = vld [vmem:[%s3847_s15] sm:$0xff]  }
 0x49e   : > { %3043 = vrsqrt.f32 %v1714_v38  ;;  %v2665_v38 = vld [vmem:[%s3846_s14] ss:$0 sm:$0xff] }
 0x49f   : > { %v1707_v39 = vpop.xlane.xlu1 %1706 }
 0x4a0   : > { %v1715_v26 = vadd.f32 1e-12, %v1707_v39  ;;  %v1703_v40 = vpop.xlane.xlu0 %1702 }
 0x4a1   : > { %v1713_v3 = vadd.f32 1e-12, %v1703_v40 }
 0x4a2   : > { %3045 = vrsqrt.f32 %v1715_v26 }
 0x4a3   : > { %v1701_v42 = vpop.xlane.xlu1 %1700  ;;  %3047 = vrsqrt.f32 %v1713_v3 }
 0x4a4   : > { %v1699_v43 = vpop.xlane.xlu0 %1698  ;;  %v1712_v2 = vadd.f32 1e-12, %v1701_v42 }
 0x4a5   : > { %v1711_v45 = vadd.f32 1e-12, %v1699_v43 }
 0x4a6   : > { %3049 = vrsqrt.f32 %v1712_v2 }
 0x4a7   : > { %v1697_v46 = vpop.xlane.xlu1 %1696  ;;  %3051 = vrsqrt.f32 %v1711_v45 }
 0x4a8   : > { %v1695_v47 = vpop.xlane.xlu0 %1694  ;;  %v1710_v48 = vadd.f32 1e-12, %v1697_v46 }
 0x4a9   : > { %v1709_v49 = vadd.f32 1e-12, %v1695_v47 }
 0x4aa   : > { %3053 = vrsqrt.f32 %v1710_v48 }
 0x4ab   : > { %v1693_v5 = vpop.xlane.xlu1 %1692  ;;  %3055 = vrsqrt.f32 %v1709_v49  ;;  %v3044_v51 = vpop.eup %3043 }
 0x4ac   : > { %v1708_v50 = vadd.f32 1e-12, %v1693_v5  ;;  %v1730_v54 = vmul.f32 %v3044_v51, %v3535_v32 }
 0x4ae   : > { %3057 = vrsqrt.f32 %v1708_v50 }
 0x4af   : > { %v3046_v52 = vpop.eup %3045 }
 0x4b0   : > { %v1731_v4 = vmul.f32 %v3046_v52, %v3546_v60  ;;  %v3048_v53 = vpop.eup %3047 }
 0x4b1   : > { %v1729_v28 = vmul.f32 %v3048_v53, %v3541_v7 }
 0x4b2   : > { %2866 = vmatprep.subr.mxu0 %v1731_v4 }
 0x4b3   : > { %v3050_v55 = vpop.eup %3049  ;;  %2867 = vmatpush3.msra.mxu0 %v1731_v4 }
 0x4b4   : > { %2868 = vmatprep.subr.mxu0 %v1730_v54  ;;  %v3052_v56 = vpop.eup %3051  ;;  %v1728_v6 = vmul.f32 %v3050_v55, %v3549_v8  ;;  %v3027_v8 = vld [vmem:[%s3845_s13 + $0x38] sm:$0xff]  }
 0x4b5   : > { %2869 = vmatpush3.msra.mxu0 %v1730_v54  ;;  %v1727_v58 = vmul.f32 %v3052_v56, %v3555_v10  ;;  %v3031_v10 = vld [vmem:[%s3845_s13 + $0x18] sm:$0xff]  }
 0x4b6   : > { %2870 = vmatprep.subr.mxu0 %v1729_v28 }
 0x4b7   : > { %v3054_v57 = vpop.eup %3053  ;;  %2871 = vmatpush3.msra.mxu0 %v1729_v28 }
 0x4b8   : > { %2872 = vmatprep.subr.mxu0 %v1728_v6  ;;  %v3056_v59 = vpop.eup %3055  ;;  %v1726_v32 = vmul.f32 %v3054_v57, %v3563_v9 }
 0x4b9   : > { %2873 = vmatpush3.msra.mxu0 %v1728_v6  ;;  %v1725_v7 = vmul.f32 %v3056_v59, %v3568_v17  ;;  %v3033_v17 = vld [vmem:[%s3845_s13 + $0x8] sm:$0xff]  }
 0x4ba   : > { %2874 = vmatprep.subr.mxu0 %v1727_v58 }
 0x4bb   : > { %v3058_v33 = vpop.eup %3057  ;;  %2875 = vmatpush3.msra.mxu0 %v1727_v58 }
 0x4bc   : > { %2876 = vmatprep.subr.mxu0 %v1726_v32  ;;  %v1724_v44 = vmul.f32 %v3058_v33, %v3573_v23  ;;  %v3035_v23 = vld [vmem:[%s3847_s15 + $0x38] sm:$0xff]  }
 0x4bd   : > { %2877 = vmatpush3.msra.mxu0 %v1726_v32 }
 0x4be   : > { %2878 = vmatprep.subr.mxu0 %v1725_v7  ;;  %1732 = vxpose.xlu1.b32.start [1/8] (short) %v1724_v44, 128 }
 0x4bf   : > { %2879 = vmatpush3.msra.mxu0 %v1725_v7 }
 0x4c0   : > { %2880 = vmatprep.subr.mxu0 %v1724_v44 }
 0x4c1   : > { %2881 = vmatpush3.msra.mxu0 %v1724_v44 }
 0x4c2   : > { %1733 = vxpose.xlu1.b32.cont [2/8] (short) %v1725_v7, 128  ;;  %2883 = vmatmul.mubr.msk.f32.vlgmr.msra.gmra.mxu0 %vm1162_vm1, %v3594_v31 }
 0x4c3   : > { %2905 = vmatprep.subr.bf16.mxu0 %v3070_v35  ;;  %2921 = vmatprep.mubr.msk.bf16.mxu0 %vm3071_vm4, %v3070_v35 }
 0x4c4   : > { %2906 = vmatpush3.bf16.msra.mxu0 %v3027_v8 }
 0x4c5   : > { %2907 = vmatprep.subr.bf16.mxu0 %v3070_v35 }
 0x4c6   : > { %1734 = vxpose.xlu1.b32.cont [3/8] (short) %v1726_v32, 128 }
 0x4c8   : > { %2908 = vmatpush3.bf16.msra.mxu0 %v3028_v63 }
 0x4c9   : > { %2909 = vmatprep.subr.bf16.mxu0 %v3070_v35 }
 0x4ca   : > { %1735 = vxpose.xlu1.b32.cont [4/8] (short) %v1727_v58, 128 }
 0x4cc   : > { %2910 = vmatpush3.bf16.msra.mxu0 %v3029_v0 }
 0x4cd   : > { %2911 = vmatprep.subr.bf16.mxu0 %v3070_v35 }
 0x4ce   : > { %1736 = vxpose.xlu1.b32.cont [5/8] (short) %v1728_v6, 128 }
 0x4d0   : > { %2912 = vmatpush3.bf16.msra.mxu0 %v3030_v1 }
 0x4d1   : > { %2913 = vmatprep.subr.bf16.mxu0 %v3070_v35 }
 0x4d2   : > { %1737 = vxpose.xlu1.b32.cont [6/8] (short) %v1729_v28, 128 }
 0x4d4   : > { %2914 = vmatpush3.bf16.msra.mxu0 %v3031_v10 }
 0x4d5   : > { %2915 = vmatprep.subr.bf16.mxu0 %v3070_v35 }
 0x4d6   : > { %1738 = vxpose.xlu1.b32.cont [7/8] (short) %v1730_v54, 128 }
 0x4d8   : > { %2916 = vmatpush3.bf16.msra.mxu0 %v3032_v16 }
 0x4d9   : > { %2917 = vmatprep.subr.bf16.mxu0 %v3070_v35 }
 0x4da   : > { %1739 = vxpose.xlu1.b32.end [8/8] (short) %v1731_v4, 128 }
 0x4dc   : > { %2918 = vmatpush3.bf16.msra.mxu0 %v3033_v17  ;;  %v2674_v17 = vld [vmem:[%s3848_s16] ss:$0 sm:$0xff] }
 0x4dd   : > { %2919 = vmatprep.subr.bf16.mxu0 %v3070_v35 }
 0x4e0   : > { %2920 = vmatpush3.bf16.msra.mxu0 %v3034_v18 }
 0x4e6   : > { %v3652_v60 = vpop.f32.mrf.mxu0 }
 0x4e7   : > { %2293 = vst.msk [vmem:[%s772_s3 + $0x8] sm:$0xff] %vm791_vm0, %v3652_v60 }
 0x4e8   : > { %v3656_v61 = vpop.f32.mrf.mxu0 }
 0x4e9   : > { %2292 = vst.msk [vmem:[%s772_s3] sm:$0xff] %vm791_vm0, %v3656_v61  ;;  %s781_s3 = scalar_lea.vmem %s3855_s23, %s2690_s2 }
 0x53a   : > { %v1748_v47 = vpop.trf.xlu1 }
 0x53b   : > { %1764 = vst.msk [vmem:[%s3747_s24] sm:$0xff] %vm1162_vm1, %v1748_v47 }
 0x53e   : > { %v1749_v49 = vpop.trf.xlu1 }
 0x53f   : > { %1765 = vst.msk [vmem:[%s3747_s24 + $0x8] sm:$0xff] %vm1162_vm1, %v1749_v49 }
 0x542   : > { %v1750_v50 = vpop.trf.xlu1 }
 0x543   : > { %1766 = vst.msk [vmem:[%s3747_s24 + $0x10] sm:$0xff] %vm1162_vm1, %v1750_v50 }
 0x546   : > { %v1751_v52 = vpop.trf.xlu1 }
 0x547   : > { %1767 = vst.msk [vmem:[%s3747_s24 + $0x18] sm:$0xff] %vm1162_vm1, %v1751_v52 }
 0x54a   : > { %v1752_v53 = vpop.trf.xlu1 }
 0x54b   : > { %1768 = vst.msk [vmem:[%s3747_s24 + $0x20] sm:$0xff] %vm1162_vm1, %v1752_v53 }
 0x54e   : > { %v1753_v55 = vpop.trf.xlu1 }
 0x54f   : > { %1769 = vst.msk [vmem:[%s3747_s24 + $0x28] sm:$0xff] %vm1162_vm1, %v1753_v55 }
 0x552   : > { %v1754_v56 = vpop.trf.xlu1 }
 0x553   : > { %1770 = vst.msk [vmem:[%s3747_s24 + $0x30] sm:$0xff] %vm1162_vm1, %v1754_v56 }
 0x556   : > { %v1755_v57 = vpop.trf.xlu1 }
 0x557   : > { %1771 = vst.msk [vmem:[%s3747_s24 + $0x38] sm:$0xff] %vm1162_vm1, %v1755_v57 }
 0x55a   : > { %v1756_v59 = vpop.trf.xlu1 }
 0x55b   : > { %1772 = vst.msk [vmem:[%s3747_s24 + $0x40] sm:$0xff] %vm1162_vm1, %v1756_v59 }
 0x55e   : > { %v1757_v33 = vpop.trf.xlu1 }
 0x55f   : > { %1773 = vst.msk [vmem:[%s3747_s24 + $0x48] sm:$0xff] %vm1162_vm1, %v1757_v33 }
 0x562   : > { %v1758_v44 = vpop.trf.xlu1 }
 0x563   : > { %1774 = vst.msk [vmem:[%s3747_s24 + $0x50] sm:$0xff] %vm1162_vm1, %v1758_v44 }
 0x566   : > { %v1759_v8 = vpop.trf.xlu1 }
 0x567   : > { %1775 = vst.msk [vmem:[%s3747_s24 + $0x58] sm:$0xff] %vm1162_vm1, %v1759_v8 }
 0x56a   : > { %v1760_v0 = vpop.trf.xlu1 }
 0x56b   : > { %1776 = vst.msk [vmem:[%s3747_s24 + $0x60] sm:$0xff] %vm1162_vm1, %v1760_v0 }
 0x56e   : > { %v1761_v10 = vpop.trf.xlu1 }
 0x56f   : > { %1777 = vst.msk [vmem:[%s3747_s24 + $0x68] sm:$0xff] %vm1162_vm1, %v1761_v10 }
 0x582   : > { %v2884_v11 = vpop.f32.mrf.mxu0 }
 0x584   : > { %v1940_v13 = vpop.f32.mrf.mxu0 }
 0x585   : > { %v1949_v9 = vpack.c.bf16 %v2884_v11, %v1940_v13  ;;  %v1762_v13 = vpop.trf.xlu1 }
 0x586   : > { %1778 = vst.msk [vmem:[%s3747_s24 + $0x70] sm:$0xff] %vm1162_vm1, %v1762_v13 }
 0x587   : > { %2902 = vmatmul.mubr.bf16.vlgmr.msra.gmra.mxu1 %v1949_v9 }
 0x588   : > { %2941 = vmatprep.mubr.msk.bf16.mxu1 %vm3071_vm4, %v3070_v35  ;;  %2926 = vmatpush3.bf16.msra.mxu1 %v3035_v23 }
 0x589   : > { %2927 = vmatprep.subr.bf16.mxu1 %v3070_v35  ;;  %v1763_v16 = vpop.trf.xlu1 }
 0x58a   : > { %1779 = vst.msk [vmem:[%s3747_s24 + $0x78] sm:$0xff] %vm1162_vm1, %v1763_v16 }
 0x58c   : > { %2928 = vmatpush3.bf16.msra.mxu1 %v3036_v24 }
 0x58d   : > { %2929 = vmatprep.subr.bf16.mxu1 %v3070_v35 }
 0x590   : > { %2930 = vmatpush3.bf16.msra.mxu1 %v3037_v25 }
 0x591   : > { %2931 = vmatprep.subr.bf16.mxu1 %v3070_v35 }
 0x594   : > { %2932 = vmatpush3.bf16.msra.mxu1 %v3038_v12 }
 0x595   : > { %2933 = vmatprep.subr.bf16.mxu1 %v3070_v35 }
 0x598   : > { %2934 = vmatpush3.bf16.msra.mxu1 %v3039_v27 }
 0x599   : > { %2935 = vmatprep.subr.bf16.mxu1 %v3070_v35 }
 0x59c   : > { %2936 = vmatpush3.bf16.msra.mxu1 %v3040_v22 }
 0x59d   : > { %2937 = vmatprep.subr.bf16.mxu1 %v3070_v35 }
 0x5a0   : > { %2938 = vmatpush3.bf16.msra.mxu1 %v3041_v36 }
 0x5a1   : > { %2939 = vmatprep.subr.bf16.mxu1 %v3070_v35  ;;  %v1146_v35 = vpop.trf.xlu0 }
 0x5a2   : > { %1163 = vst.msk [vmem:[%s3742_s5] sm:$0xff] %vm1162_vm1, %v1146_v35 }
 0x5a4   : > { %2940 = vmatpush3.bf16.msra.mxu1 %v3042_v37 }
 0x5a5   : > { %v1147_v48 = vpop.trf.xlu0 }
 0x5a6   : > { %1164 = vst.msk [vmem:[%s3742_s5 + $0x8] sm:$0xff] %vm1162_vm1, %v1147_v48 }
 0x5a9   : > { %v1148_v5 = vpop.trf.xlu0 }
 0x5aa   : > { %1165 = vst.msk [vmem:[%s3742_s5 + $0x10] sm:$0xff] %vm1162_vm1, %v1148_v5 }
 0x5ad   : > { %v1149_v51 = vpop.trf.xlu0 }
 0x5ae   : > { %1166 = vst.msk [vmem:[%s3742_s5 + $0x18] sm:$0xff] %vm1162_vm1, %v1149_v51 }
 0x5b1   : > { %v1150_v4 = vpop.trf.xlu0 }
 0x5b2   : > { %1167 = vst.msk [vmem:[%s3742_s5 + $0x20] sm:$0xff] %vm1162_vm1, %v1150_v4 }
 0x5b5   : > { %v1151_v54 = vpop.trf.xlu0 }
 0x5b6   : > { %1168 = vst.msk [vmem:[%s3742_s5 + $0x28] sm:$0xff] %vm1162_vm1, %v1151_v54 }
 0x5b9   : > { %v1152_v28 = vpop.trf.xlu0 }
 0x5ba   : > { %1169 = vst.msk [vmem:[%s3742_s5 + $0x30] sm:$0xff] %vm1162_vm1, %v1152_v28 }
 0x5bd   : > { %v1153_v6 = vpop.trf.xlu0 }
 0x5be   : > { %1170 = vst.msk [vmem:[%s3742_s5 + $0x38] sm:$0xff] %vm1162_vm1, %v1153_v6 }
 0x5c1   : > { %v1154_v58 = vpop.trf.xlu0 }
 0x5c2   : > { %1171 = vst.msk [vmem:[%s3742_s5 + $0x40] sm:$0xff] %vm1162_vm1, %v1154_v58 }
 0x5c5   : > { %v1155_v32 = vpop.trf.xlu0 }
 0x5c6   : > { %1172 = vst.msk [vmem:[%s3742_s5 + $0x48] sm:$0xff] %vm1162_vm1, %v1155_v32 }
 0x5c9   : > { %v1156_v7 = vpop.trf.xlu0 }
 0x5ca   : > { %1173 = vst.msk [vmem:[%s3742_s5 + $0x50] sm:$0xff] %vm1162_vm1, %v1156_v7 }
 0x5cd   : > { %v1157_v62 = vpop.trf.xlu0 }
 0x5ce   : > { %1174 = vst.msk [vmem:[%s3742_s5 + $0x58] sm:$0xff] %vm1162_vm1, %v1157_v62 }
 0x5d1   : > { %v1158_v63 = vpop.trf.xlu0 }
 0x5d2   : > { %1175 = vst.msk [vmem:[%s3742_s5 + $0x60] sm:$0xff] %vm1162_vm1, %v1158_v63 }
 0x5d5   : > { %v1159_v1 = vpop.trf.xlu0 }
 0x5d6   : > { %1176 = vst.msk [vmem:[%s3742_s5 + $0x68] sm:$0xff] %vm1162_vm1, %v1159_v1 }
 0x5d9   : > { %v1160_v11 = vpop.trf.xlu0 }
 0x5da   : > { %1177 = vst.msk [vmem:[%s3742_s5 + $0x70] sm:$0xff] %vm1162_vm1, %v1160_v11 }
 0x5dd   : > { %v1161_v9 = vpop.trf.xlu0 }
 0x5de   : > { %1178 = vst.msk [vmem:[%s3742_s5 + $0x78] sm:$0xff] %vm1162_vm1, %v1161_v9 }
 0x647   : > { %v2055_v30 = vpop.f32.mrf.mxu1 }
 0x648   : > { %v2056_v41 = vadd.f32 %v2656_v29, %v2055_v30 }
 0x649   : > { %v2903_v34 = vpop.f32.mrf.mxu1 }
 0x64a   : > { %v2062_v19 = vmax.f32 %v2056_v41, 0.0 }
 0x64b   : > { %v2058_v31 = vpop.f32.mrf.mxu1 }
 0x64c   : > { %v2059_v14 = vadd.f32 %v2656_v29, %v2058_v31 }
 0x64d   : > { %v2904_v15 = vpop.f32.mrf.mxu1 }
 0x64e   : > { %v2063_v20 = vmax.f32 %v2059_v14, 0.0 }
 0x650   : > { %v2064_v21 = vpack.c.bf16 %v2063_v20, %v2062_v19 }
 0x652   : > { %2922 = vmatmul.mubr.bf16.vlgmr.msra.gmra.mxu0 %v2064_v21 }
 0x712   : > { %v2170_v39 = vpop.f32.mrf.mxu0 }
 0x713   : > { %v2171_v40 = vadd.f32 %v2665_v38, %v2170_v39 }
 0x714   : > { %v2923_v26 = vpop.f32.mrf.mxu0 }
 0x715   : > { %v2177_v2 = vmax.f32 %v2171_v40, 0.0 }
 0x716   : > { %v2173_v3 = vpop.f32.mrf.mxu0 }
 0x717   : > { %v2174_v42 = vadd.f32 %v2665_v38, %v2173_v3 }
 0x718   : > { %v2924_v43 = vpop.f32.mrf.mxu0 }
 0x719   : > { %v2178_v45 = vmax.f32 %v2174_v42, 0.0 }
 0x71b   : > { %v2179_v46 = vpack.c.bf16 %v2178_v45, %v2177_v2 }
 0x71d   : > { %2942 = vmatmul.mubr.bf16.vlgmr.msra.gmra.mxu1 %v2179_v46 }
 0x7dd   : > { %v2285_v18 = vpop.f32.mrf.mxu1 }
 0x7de   : > { %v2286_v23 = vadd.f32 %v2674_v17, %v2285_v18 }
 0x7df   : > { %v2943_v24 = vpop.f32.mrf.mxu1 }
 0x7e0   : > { %v2328_v25 = vadd.f32 %v2286_v23, %v3656_v61  ;;  %2294 = vxpose.xlu0.b32.start [1/2] (short) (narrow) %v2286_v23, 8 }
 0x7e1   : > { %v2288_v12 = vpop.f32.mrf.mxu1 }
 0x7e2   : > { %2330 = vst.msk [vmem:[%s781_s3] sm:$0xff] %vm791_vm0, %v2328_v25  ;;  %v2289_v27 = vadd.f32 %v2674_v17, %v2288_v12 }
 0x7e3   : > { %v2944_v29 = vpop.f32.mrf.mxu1 }
 0x7e4   : > { %v2329_v30 = vadd.f32 %v3652_v60, %v2289_v27  ;;  %2295 = vxpose.xlu0.b32.end [2/2] (short) (narrow) %v2289_v27, 8 }
 0x7e6   : > { %2331 = vst.msk [vmem:[%s781_s3 + $0x8] sm:$0xff] %vm791_vm0, %v2329_v30 }
 0x85c   : > { %v2310_v34 = vpop.trf.xlu0 }
 0x85d   : > { %2327 = vst.msk [vmem:[%s776_s6] sm:$0x1f] %vm2326_vm5, %v2310_v34 }
 0x85e PF: > { %s34_s4 = sadd.s32 1, %s3065_s4  }
 0x85f   : > { %p31_p4 = scmp.ge.s32.totalorder %s34_s4, 4  }
 0x861   :  { %33 = sbr.rel (!%p31_p4) target bundleno = 10 (0xa), region = 190 }

</bundles_post_ra>
